<compile_context>
chip_gen: v7x
topology: tpu7x:2x2x1
jax: 0.10.0
libtpu: 0.0.40
codegen_flags: <defaults>
</compile_context>

<pallas_src>
import numpy as np
import jax
import jax.numpy as jnp
from jax import lax
from jax.experimental import pallas as pl
from jax.experimental.pallas import tpu as pltpu

# Order in which the prepared weight slabs are passed to the kernel.
_PARAM_ORDER = ("t1", "b1", "ser1", "sor1", "sec1", "soc1",
                "t2", "b2", "ser2", "sor2", "sec2", "soc2",
                "w1p", "fb1", "w2p", "fb2", "w3p", "fb3")


# ----------------------------- the fused kernel -------------------------------

def _cnn_fused_kernel(x_ref, t1_ref, b1_ref, ser1_ref, sor1_ref, sec1_ref,
                      soc1_ref, t2_ref, b2_ref, ser2_ref, sor2_ref, sec2_ref,
                      soc2_ref, w1p_ref, fb1_ref, w2p_ref, fb2_ref, w3p_ref,
                      fb3_ref, o_ref):
    """Whole CNN forward for one image; all intermediates live in VMEM/vregs."""
    f32 = jnp.float32
    dot = lambda a, b: jnp.dot(a, b, preferred_element_type=f32)

    x = x_ref[0]                                   # (30, 30) zero-padded image

    # conv1 3x3 / pad=1 (Cin=1 -> Cout=6): 3 accumulated Toeplitz matmuls.
    # Output layout: rows = output row i, cols = c*28 + j  (lane-dense, 168).
    y1 = dot(x[0:28, :], t1_ref[0])
    for kh in range(1, 3):
        y1 = y1 + dot(x[kh:kh + 28, :], t1_ref[kh])
    y1 = jnp.maximum(y1 + b1_ref[...], 0.0)        # (28, 168)  bias + ReLU

    # maxpool1 2x2/2: even/odd selection matmuls + elementwise max.
    r1 = jnp.maximum(dot(ser1_ref[...], y1), dot(sor1_ref[...], y1))   # (14,168)
    p1 = jnp.maximum(dot(r1, sec1_ref[...]), dot(r1, soc1_ref[...]))   # (14, 84)

    # conv2 5x5 / pad=0 (Cin=6 -> Cout=16): 5 accumulated Toeplitz matmuls.
    # Output layout: rows = output row i, cols = d*10 + j  (160 lanes).
    y2 = dot(p1[0:10, :], t2_ref[0])
    for kh in range(1, 5):
        y2 = y2 + dot(p1[kh:kh + 10, :], t2_ref[kh])
    y2 = jnp.maximum(y2 + b2_ref[...], 0.0)        # (10, 160)  bias + ReLU

    # maxpool2 2x2/2.
    r2 = jnp.maximum(dot(ser2_ref[...], y2), dot(sor2_ref[...], y2))   # (5, 160)
    p2 = jnp.maximum(dot(r2, sec2_ref[...]), dot(r2, soc2_ref[...]))   # (5, 80)

    # FC head Linear(400,120)->Linear(120,84)->Linear(84,10), no activations
    # (matches the PyTorch nn.Sequential exactly).  PyTorch's NCHW flatten is
    # folded into w1p; hidden dims are zero-padded to 128 lanes.
    h = fb1_ref[...]                               # (1, 128)
    for i in range(5):
        h = h + dot(p2[i:i + 1, :], w1p_ref[i])
    h = dot(h, w2p_ref[...]) + fb2_ref[...]        # (1, 128)
    out = dot(h, w3p_ref[...]) + fb3_ref[...]      # (1, 10)

    o_ref[0] = out


# ------------------------------ forward wrapper --------------------------------

def _bcast_spec(arr):
    """Full-array block, same block for every grid step (loaded once)."""
    zeros = (0,) * arr.ndim
    return pl.BlockSpec(arr.shape, lambda n, _z=zeros: _z)


@jax.jit
def cnn_forward(x_nchw, kp):
    """Forward of CNN(1, 10). x_nchw: (N, 1, 28, 28); kp: prepare_kernel_params."""
    N = x_nchw.shape[0]
    x = x_nchw.astype(jnp.float32).reshape(N, 28, 28)      # Cin = 1
    xpad = jnp.pad(x, ((0, 0), (1, 1), (1, 1)))            # conv1 padding=1
    weights = [kp[k] for k in _PARAM_ORDER]
    out = pl.pallas_call(
        _cnn_fused_kernel,
        out_shape=jax.ShapeDtypeStruct((N, 1, 10), jnp.float32),
        grid=(N,),                                         # one program per image
        in_specs=[pl.BlockSpec((1, 30, 30), lambda n: (n, 0, 0))]
                 + [_bcast_spec(w) for w in weights],
        out_specs=pl.BlockSpec((1, 1, 10), lambda n: (n, 0, 0)),
        compiler_params=pltpu.CompilerParams(
            dimension_semantics=("parallel",)),            # shards batch on v7x
    )(xpad, *weights)
    return out.reshape(N, 10)


# -------------------- one-time host-side weight lowering -----------------------

def prepare_kernel_params(p):
    """Lower PyTorch-layout weights into the matmul slabs the kernel consumes:
    Toeplitz conv weights, pooling selection matrices, permuted/padded FC
    weights.  Done once, off the hot path."""
    w1 = np.asarray(p["w1"], np.float32)    # (6, 1, 3, 3)
    b1 = np.asarray(p["b1"], np.float32)
    w2 = np.asarray(p["w2"], np.float32)    # (16, 6, 5, 5)
    b2 = np.asarray(p["b2"], np.float32)
    fw1 = np.asarray(p["fw1"], np.float32)  # (120, 400)
    fb1 = np.asarray(p["fb1"], np.float32)
    fw2 = np.asarray(p["fw2"], np.float32)  # (84, 120)
    fb2 = np.asarray(p["fb2"], np.float32)
    fw3 = np.asarray(p["fw3"], np.float32)  # (10, 84)
    fb3 = np.asarray(p["fb3"], np.float32)

    # conv1: y1[i, c*28+j] = sum_kh (xpad[kh+i, :] @ t1[kh])[c*28+j] + b1[c]
    t1 = np.zeros((3, 30, 6 * 28), np.float32)
    j28 = np.arange(28)
    for c in range(6):
        for kh in range(3):
            for kw in range(3):
                t1[kh, j28 + kw, c * 28 + j28] = w1[c, 0, kh, kw]
    b1c = np.repeat(b1, 28)[None, :]                        # (1, 168)

    # pool1 even/odd selection matrices.
    ser1 = np.zeros((14, 28), np.float32)
    sor1 = np.zeros((14, 28), np.float32)
    r14 = np.arange(14)
    ser1[r14, 2 * r14] = 1.0
    sor1[r14, 2 * r14 + 1] = 1.0
    sec1 = np.zeros((6 * 28, 6 * 14), np.float32)
    soc1 = np.zeros((6 * 28, 6 * 14), np.float32)
    for c in range(6):
        sec1[c * 28 + 2 * r14, c * 14 + r14] = 1.0
        soc1[c * 28 + 2 * r14 + 1, c * 14 + r14] = 1.0

    # conv2: y2[i, d*10+j] = sum_kh (p1[kh+i, :] @ t2[kh])[d*10+j] + b2[d]
    t2 = np.zeros((5, 6 * 14, 16 * 10), np.float32)
    j10 = np.arange(10)
    for d in range(16):
        for c in range(6):
            for kh in range(5):
                for kw in range(5):
                    t2[kh, c * 14 + j10 + kw, d * 10 + j10] = w2[d, c, kh, kw]
    b2c = np.repeat(b2, 10)[None, :]                        # (1, 160)

    # pool2 even/odd selection matrices.
    ser2 = np.zeros((5, 10), np.float32)
    sor2 = np.zeros((5, 10), np.float32)
    r5 = np.arange(5)
    ser2[r5, 2 * r5] = 1.0
    sor2[r5, 2 * r5 + 1] = 1.0
    sec2 = np.zeros((160, 80), np.float32)
    soc2 = np.zeros((160, 80), np.float32)
    for d in range(16):
        sec2[d * 10 + 2 * r5, d * 5 + r5] = 1.0
        soc2[d * 10 + 2 * r5 + 1, d * 5 + r5] = 1.0

    # FC1 with PyTorch's NCHW flatten (index d*25 + i*5 + j) folded in; the
    # kernel activation layout is p2[i, d*5+j].  Hidden dims padded to 128.
    w1p = np.zeros((5, 80, 128), np.float32)
    w1r = fw1.reshape(120, 16, 5, 5)                        # (k, d, i, j)
    w1p[:, :, :120] = np.transpose(w1r, (2, 1, 3, 0)).reshape(5, 80, 120)
    fb1p = np.zeros((1, 128), np.float32)
    fb1p[0, :120] = fb1

    w2p = np.zeros((128, 128), np.float32)
    w2p[:120, :84] = fw2.T
    fb2p = np.zeros((1, 128), np.float32)
    fb2p[0, :84] = fb2

    w3p = np.zeros((128, 10), np.float32)
    w3p[:84, :] = fw3.T
    fb3p = fb3[None, :]                                     # (1, 10)

    slabs = dict(t1=t1, b1=b1c, ser1=ser1, sor1=sor1, sec1=sec1, soc1=soc1,
                 t2=t2, b2=b2c, ser2=ser2, sor2=sor2, sec2=sec2, soc2=soc2,
                 w1p=w1p, fb1=fb1p, w2p=w2p, fb2=fb2p, w3p=w3p, fb3=fb3p)
    return {k: jnp.asarray(v) for k, v in slabs.items()}


# ------------------------- deterministic parameter init ------------------------

def init_params(key, in_dim=1, n_class=10):
    ks = jax.random.split(key, 10)

    def u(k, shape, fan_in):
        bound = 1.0 / np.sqrt(fan_in)
        return jax.random.uniform(k, shape, jnp.float32, -bound, bound)

    return {
        # PyTorch weight layouts: Conv2d (Cout,Cin,KH,KW), Linear (out,in).
        "w1": u(ks[0], (6, in_dim, 3, 3), in_dim * 9),
        "b1": u(ks[1], (6,), in_dim * 9),
        "w2": u(ks[2], (16, 6, 5, 5), 6 * 25),
        "b2": u(ks[3], (16,), 6 * 25),
        "fw1": u(ks[4], (120, 400), 400),
        "fb1": u(ks[5], (120,), 400),
        "fw2": u(ks[6], (84, 120), 120),
        "fb2": u(ks[7], (84,), 120),
        "fw3": u(ks[8], (n_class, 84), 84),
        "fb3": u(ks[9], (n_class,), 84),
    }


# ------------------------------ pure-JAX reference ------------------------------

def reference_forward(x_nchw, p):
    x = x_nchw.astype(jnp.float32)

    def conv(x, w, b, pad):
        y = lax.conv_general_dilated(
            x, w, (1, 1), [(pad, pad), (pad, pad)],
            dimension_numbers=("NCHW", "OIHW", "NCHW"))
        return jax.nn.relu(y + b.reshape(1, -1, 1, 1))

    def pool(x):
        return lax.reduce_window(x, -jnp.inf, lax.max,
                                 (1, 1, 2, 2), (1, 1, 2, 2), "VALID")

    y = pool(conv(x, p["w1"], p["b1"], 1))
    y = pool(conv(y, p["w2"], p["b2"], 0))
    h = y.reshape(y.shape[0], -1)
    h = h @ p["fw1"].T + p["fb1"]
    h = h @ p["fw2"].T + p["fb2"]
    return h @ p["fw3"].T + p["fb3"]


# ------------------------------------ main --------------------------------------

if __name__ == "__main__":
    key = jax.random.PRNGKey(0)
    kx, kparam = jax.random.split(key)
    # The module's fc(400) pins the input to 1x28x28; batch=2.
    x = jax.random.normal(kx, (2, 1, 28, 28), jnp.float32)   # NCHW, like PyTorch
    params = init_params(kparam, in_dim=1, n_class=10)
    kernel_params = prepare_kernel_params(params)            # one-time lowering

    out = jax.block_until_ready(cnn_forward(x, kernel_params))
    assert out.shape == (2, 10) and out.dtype == jnp.float32

    ref = reference_forward(x, params)
    np.testing.assert_allclose(np.asarray(out), np.asarray(ref),
                               rtol=1e-3, atol=1e-3)
    print("KERNEL_OK")
</pallas_src>

<mosaic_0001>
module attributes {stable_mosaic.version = 11 : i64} {
  func.func @_cnn_fused_kernel(%arg0: i32, %arg1: memref<1x30x30xf32, #tpu.memory_space<vmem>>, %arg2: memref<3x30x168xf32, #tpu.memory_space<vmem>>, %arg3: memref<1x168xf32, #tpu.memory_space<vmem>>, %arg4: memref<14x28xf32, #tpu.memory_space<vmem>>, %arg5: memref<14x28xf32, #tpu.memory_space<vmem>>, %arg6: memref<168x84xf32, #tpu.memory_space<vmem>>, %arg7: memref<168x84xf32, #tpu.memory_space<vmem>>, %arg8: memref<5x84x160xf32, #tpu.memory_space<vmem>>, %arg9: memref<1x160xf32, #tpu.memory_space<vmem>>, %arg10: memref<5x10xf32, #tpu.memory_space<vmem>>, %arg11: memref<5x10xf32, #tpu.memory_space<vmem>>, %arg12: memref<160x80xf32, #tpu.memory_space<vmem>>, %arg13: memref<160x80xf32, #tpu.memory_space<vmem>>, %arg14: memref<5x80x128xf32, #tpu.memory_space<vmem>>, %arg15: memref<1x128xf32, #tpu.memory_space<vmem>>, %arg16: memref<128x128xf32, #tpu.memory_space<vmem>>, %arg17: memref<1x128xf32, #tpu.memory_space<vmem>>, %arg18: memref<128x10xf32, #tpu.memory_space<vmem>>, %arg19: memref<1x10xf32, #tpu.memory_space<vmem>>, %arg20: memref<1x1x10xf32, #tpu.memory_space<vmem>>) attributes {dimension_semantics = [#tpu.dimension_semantics<parallel>], iteration_bounds = array<i64: 2>, scalar_prefetch = 0 : i64, scratch_operands = 0 : i64, tpu.core_type = #tpu.core_type<tc>, window_params = [{transform_indices = @transform_0, window_bounds = array<i64: 1, 30, 30>}, {pipeline_mode = #tpu.pipeline_mode<synchronous>, transform_indices = @transform_1, window_bounds = array<i64: 3, 30, 168>}, {pipeline_mode = #tpu.pipeline_mode<synchronous>, transform_indices = @transform_2, window_bounds = array<i64: 1, 168>}, {pipeline_mode = #tpu.pipeline_mode<synchronous>, transform_indices = @transform_3, window_bounds = array<i64: 14, 28>}, {pipeline_mode = #tpu.pipeline_mode<synchronous>, transform_indices = @transform_4, window_bounds = array<i64: 14, 28>}, {pipeline_mode = #tpu.pipeline_mode<synchronous>, transform_indices = @transform_5, window_bounds = array<i64: 168, 84>}, {pipeline_mode = #tpu.pipeline_mode<synchronous>, transform_indices = @transform_6, window_bounds = array<i64: 168, 84>}, {pipeline_mode = #tpu.pipeline_mode<synchronous>, transform_indices = @transform_7, window_bounds = array<i64: 5, 84, 160>}, {pipeline_mode = #tpu.pipeline_mode<synchronous>, transform_indices = @transform_8, window_bounds = array<i64: 1, 160>}, {pipeline_mode = #tpu.pipeline_mode<synchronous>, transform_indices = @transform_9, window_bounds = array<i64: 5, 10>}, {pipeline_mode = #tpu.pipeline_mode<synchronous>, transform_indices = @transform_10, window_bounds = array<i64: 5, 10>}, {pipeline_mode = #tpu.pipeline_mode<synchronous>, transform_indices = @transform_11, window_bounds = array<i64: 160, 80>}, {pipeline_mode = #tpu.pipeline_mode<synchronous>, transform_indices = @transform_12, window_bounds = array<i64: 160, 80>}, {pipeline_mode = #tpu.pipeline_mode<synchronous>, transform_indices = @transform_13, window_bounds = array<i64: 5, 80, 128>}, {pipeline_mode = #tpu.pipeline_mode<synchronous>, transform_indices = @transform_14, window_bounds = array<i64: 1, 128>}, {pipeline_mode = #tpu.pipeline_mode<synchronous>, transform_indices = @transform_15, window_bounds = array<i64: 128, 128>}, {pipeline_mode = #tpu.pipeline_mode<synchronous>, transform_indices = @transform_16, window_bounds = array<i64: 1, 128>}, {pipeline_mode = #tpu.pipeline_mode<synchronous>, transform_indices = @transform_17, window_bounds = array<i64: 128, 10>}, {pipeline_mode = #tpu.pipeline_mode<synchronous>, transform_indices = @transform_18, window_bounds = array<i64: 1, 10>}, {transform_indices = @transform_19, window_bounds = array<i64: 1, 1, 10>}]} {
    %c0 = arith.constant 0 : index
    %c0_0 = arith.constant 0 : index
    %c0_1 = arith.constant 0 : index
    %0 = vector.load %arg1[%c0, %c0_0, %c0_1] : memref<1x30x30xf32, #tpu.memory_space<vmem>>, vector<1x30x30xf32>
    %1 = vector.shape_cast %0 : vector<1x30x30xf32> to vector<30x30xf32>
    %2 = vector.extract_strided_slice %1 {offsets = [0, 0], sizes = [28, 30], strides = [1, 1]} : vector<30x30xf32> to vector<28x30xf32>
    %c0_2 = arith.constant 0 : index
    %c0_3 = arith.constant 0 : index
    %c0_4 = arith.constant 0 : index
    %3 = vector.load %arg2[%c0_2, %c0_3, %c0_4] : memref<3x30x168xf32, #tpu.memory_space<vmem>>, vector<1x30x168xf32>
    %4 = vector.shape_cast %3 : vector<1x30x168xf32> to vector<30x168xf32>
    %cst = arith.constant dense<0.000000e+00> : vector<28x168xf32>
    %5 = tpu.matmul %2, %4, %cst {dimension_numbers = #tpu.dot_dimension_numbers<[1], [0], [0], [1], [0, 0, 1, 1], [], []>} : vector<28x30xf32>, vector<30x168xf32>, vector<28x168xf32> -> vector<28x168xf32>
    %6 = vector.extract_strided_slice %1 {offsets = [1, 0], sizes = [28, 30], strides = [1, 1]} : vector<30x30xf32> to vector<28x30xf32>
    %c1 = arith.constant 1 : index
    %c0_5 = arith.constant 0 : index
    %c0_6 = arith.constant 0 : index
    %7 = vector.load %arg2[%c1, %c0_5, %c0_6] : memref<3x30x168xf32, #tpu.memory_space<vmem>>, vector<1x30x168xf32>
    %8 = vector.shape_cast %7 : vector<1x30x168xf32> to vector<30x168xf32>
    %cst_7 = arith.constant dense<0.000000e+00> : vector<28x168xf32>
    %9 = tpu.matmul %6, %8, %cst_7 {dimension_numbers = #tpu.dot_dimension_numbers<[1], [0], [0], [1], [0, 0, 1, 1], [], []>} : vector<28x30xf32>, vector<30x168xf32>, vector<28x168xf32> -> vector<28x168xf32>
    %10 = arith.addf %5, %9 : vector<28x168xf32>
    %11 = vector.extract_strided_slice %1 {offsets = [2, 0], sizes = [28, 30], strides = [1, 1]} : vector<30x30xf32> to vector<28x30xf32>
    %c2 = arith.constant 2 : index
    %c0_8 = arith.constant 0 : index
    %c0_9 = arith.constant 0 : index
    %12 = vector.load %arg2[%c2, %c0_8, %c0_9] : memref<3x30x168xf32, #tpu.memory_space<vmem>>, vector<1x30x168xf32>
    %13 = vector.shape_cast %12 : vector<1x30x168xf32> to vector<30x168xf32>
    %cst_10 = arith.constant dense<0.000000e+00> : vector<28x168xf32>
    %14 = tpu.matmul %11, %13, %cst_10 {dimension_numbers = #tpu.dot_dimension_numbers<[1], [0], [0], [1], [0, 0, 1, 1], [], []>} : vector<28x30xf32>, vector<30x168xf32>, vector<28x168xf32> -> vector<28x168xf32>
    %15 = arith.addf %10, %14 : vector<28x168xf32>
    %c0_11 = arith.constant 0 : index
    %c0_12 = arith.constant 0 : index
    %16 = vector.load %arg3[%c0_11, %c0_12] : memref<1x168xf32, #tpu.memory_space<vmem>>, vector<1x168xf32>
    %17 = vector.broadcast %16 : vector<1x168xf32> to vector<28x168xf32>
    %18 = arith.addf %15, %17 : vector<28x168xf32>
    %cst_13 = arith.constant 0.000000e+00 : f32
    %19 = vector.broadcast %cst_13 : f32 to vector<28x168xf32>
    %20 = arith.maximumf %18, %19 : vector<28x168xf32>
    %c0_14 = arith.constant 0 : index
    %c0_15 = arith.constant 0 : index
    %21 = vector.load %arg4[%c0_14, %c0_15] : memref<14x28xf32, #tpu.memory_space<vmem>>, vector<14x28xf32>
    %cst_16 = arith.constant dense<0.000000e+00> : vector<14x168xf32>
    %22 = tpu.matmul %21, %20, %cst_16 {dimension_numbers = #tpu.dot_dimension_numbers<[1], [0], [0], [1], [0, 0, 1, 1], [], []>} : vector<14x28xf32>, vector<28x168xf32>, vector<14x168xf32> -> vector<14x168xf32>
    %c0_17 = arith.constant 0 : index
    %c0_18 = arith.constant 0 : index
    %23 = vector.load %arg5[%c0_17, %c0_18] : memref<14x28xf32, #tpu.memory_space<vmem>>, vector<14x28xf32>
    %cst_19 = arith.constant dense<0.000000e+00> : vector<14x168xf32>
    %24 = tpu.matmul %23, %20, %cst_19 {dimension_numbers = #tpu.dot_dimension_numbers<[1], [0], [0], [1], [0, 0, 1, 1], [], []>} : vector<14x28xf32>, vector<28x168xf32>, vector<14x168xf32> -> vector<14x168xf32>
    %25 = arith.maximumf %22, %24 : vector<14x168xf32>
    %c0_20 = arith.constant 0 : index
    %c0_21 = arith.constant 0 : index
    %26 = vector.load %arg6[%c0_20, %c0_21] : memref<168x84xf32, #tpu.memory_space<vmem>>, vector<168x84xf32>
    %cst_22 = arith.constant dense<0.000000e+00> : vector<14x84xf32>
    %27 = tpu.matmul %25, %26, %cst_22 {dimension_numbers = #tpu.dot_dimension_numbers<[1], [0], [0], [1], [0, 0, 1, 1], [], []>} : vector<14x168xf32>, vector<168x84xf32>, vector<14x84xf32> -> vector<14x84xf32>
    %c0_23 = arith.constant 0 : index
    %c0_24 = arith.constant 0 : index
    %28 = vector.load %arg7[%c0_23, %c0_24] : memref<168x84xf32, #tpu.memory_space<vmem>>, vector<168x84xf32>
    %cst_25 = arith.constant dense<0.000000e+00> : vector<14x84xf32>
    %29 = tpu.matmul %25, %28, %cst_25 {dimension_numbers = #tpu.dot_dimension_numbers<[1], [0], [0], [1], [0, 0, 1, 1], [], []>} : vector<14x168xf32>, vector<168x84xf32>, vector<14x84xf32> -> vector<14x84xf32>
    %30 = arith.maximumf %27, %29 : vector<14x84xf32>
    %31 = vector.extract_strided_slice %30 {offsets = [0, 0], sizes = [10, 84], strides = [1, 1]} : vector<14x84xf32> to vector<10x84xf32>
    %c0_26 = arith.constant 0 : index
    %c0_27 = arith.constant 0 : index
    %c0_28 = arith.constant 0 : index
    %32 = vector.load %arg8[%c0_26, %c0_27, %c0_28] : memref<5x84x160xf32, #tpu.memory_space<vmem>>, vector<1x84x160xf32>
    %33 = vector.shape_cast %32 : vector<1x84x160xf32> to vector<84x160xf32>
    %cst_29 = arith.constant dense<0.000000e+00> : vector<10x160xf32>
    %34 = tpu.matmul %31, %33, %cst_29 {dimension_numbers = #tpu.dot_dimension_numbers<[1], [0], [0], [1], [0, 0, 1, 1], [], []>} : vector<10x84xf32>, vector<84x160xf32>, vector<10x160xf32> -> vector<10x160xf32>
    %35 = vector.extract_strided_slice %30 {offsets = [1, 0], sizes = [10, 84], strides = [1, 1]} : vector<14x84xf32> to vector<10x84xf32>
    %c1_30 = arith.constant 1 : index
    %c0_31 = arith.constant 0 : index
    %c0_32 = arith.constant 0 : index
    %36 = vector.load %arg8[%c1_30, %c0_31, %c0_32] : memref<5x84x160xf32, #tpu.memory_space<vmem>>, vector<1x84x160xf32>
    %37 = vector.shape_cast %36 : vector<1x84x160xf32> to vector<84x160xf32>
    %cst_33 = arith.constant dense<0.000000e+00> : vector<10x160xf32>
    %38 = tpu.matmul %35, %37, %cst_33 {dimension_numbers = #tpu.dot_dimension_numbers<[1], [0], [0], [1], [0, 0, 1, 1], [], []>} : vector<10x84xf32>, vector<84x160xf32>, vector<10x160xf32> -> vector<10x160xf32>
    %39 = arith.addf %34, %38 : vector<10x160xf32>
    %40 = vector.extract_strided_slice %30 {offsets = [2, 0], sizes = [10, 84], strides = [1, 1]} : vector<14x84xf32> to vector<10x84xf32>
    %c2_34 = arith.constant 2 : index
    %c0_35 = arith.constant 0 : index
    %c0_36 = arith.constant 0 : index
    %41 = vector.load %arg8[%c2_34, %c0_35, %c0_36] : memref<5x84x160xf32, #tpu.memory_space<vmem>>, vector<1x84x160xf32>
    %42 = vector.shape_cast %41 : vector<1x84x160xf32> to vector<84x160xf32>
    %cst_37 = arith.constant dense<0.000000e+00> : vector<10x160xf32>
    %43 = tpu.matmul %40, %42, %cst_37 {dimension_numbers = #tpu.dot_dimension_numbers<[1], [0], [0], [1], [0, 0, 1, 1], [], []>} : vector<10x84xf32>, vector<84x160xf32>, vector<10x160xf32> -> vector<10x160xf32>
    %44 = arith.addf %39, %43 : vector<10x160xf32>
    %45 = vector.extract_strided_slice %30 {offsets = [3, 0], sizes = [10, 84], strides = [1, 1]} : vector<14x84xf32> to vector<10x84xf32>
    %c3 = arith.constant 3 : index
    %c0_38 = arith.constant 0 : index
    %c0_39 = arith.constant 0 : index
    %46 = vector.load %arg8[%c3, %c0_38, %c0_39] : memref<5x84x160xf32, #tpu.memory_space<vmem>>, vector<1x84x160xf32>
    %47 = vector.shape_cast %46 : vector<1x84x160xf32> to vector<84x160xf32>
    %cst_40 = arith.constant dense<0.000000e+00> : vector<10x160xf32>
    %48 = tpu.matmul %45, %47, %cst_40 {dimension_numbers = #tpu.dot_dimension_numbers<[1], [0], [0], [1], [0, 0, 1, 1], [], []>} : vector<10x84xf32>, vector<84x160xf32>, vector<10x160xf32> -> vector<10x160xf32>
    %49 = arith.addf %44, %48 : vector<10x160xf32>
    %50 = vector.extract_strided_slice %30 {offsets = [4, 0], sizes = [10, 84], strides = [1, 1]} : vector<14x84xf32> to vector<10x84xf32>
    %c4 = arith.constant 4 : index
    %c0_41 = arith.constant 0 : index
    %c0_42 = arith.constant 0 : index
    %51 = vector.load %arg8[%c4, %c0_41, %c0_42] : memref<5x84x160xf32, #tpu.memory_space<vmem>>, vector<1x84x160xf32>
    %52 = vector.shape_cast %51 : vector<1x84x160xf32> to vector<84x160xf32>
    %cst_43 = arith.constant dense<0.000000e+00> : vector<10x160xf32>
    %53 = tpu.matmul %50, %52, %cst_43 {dimension_numbers = #tpu.dot_dimension_numbers<[1], [0], [0], [1], [0, 0, 1, 1], [], []>} : vector<10x84xf32>, vector<84x160xf32>, vector<10x160xf32> -> vector<10x160xf32>
    %54 = arith.addf %49, %53 : vector<10x160xf32>
    %c0_44 = arith.constant 0 : index
    %c0_45 = arith.constant 0 : index
    %55 = vector.load %arg9[%c0_44, %c0_45] : memref<1x160xf32, #tpu.memory_space<vmem>>, vector<1x160xf32>
    %56 = vector.broadcast %55 : vector<1x160xf32> to vector<10x160xf32>
    %57 = arith.addf %54, %56 : vector<10x160xf32>
    %cst_46 = arith.constant 0.000000e+00 : f32
    %58 = vector.broadcast %cst_46 : f32 to vector<10x160xf32>
    %59 = arith.maximumf %57, %58 : vector<10x160xf32>
    %c0_47 = arith.constant 0 : index
    %c0_48 = arith.constant 0 : index
    %60 = vector.load %arg10[%c0_47, %c0_48] : memref<5x10xf32, #tpu.memory_space<vmem>>, vector<5x10xf32>
    %cst_49 = arith.constant dense<0.000000e+00> : vector<5x160xf32>
    %61 = tpu.matmul %60, %59, %cst_49 {dimension_numbers = #tpu.dot_dimension_numbers<[1], [0], [0], [1], [0, 0, 1, 1], [], []>} : vector<5x10xf32>, vector<10x160xf32>, vector<5x160xf32> -> vector<5x160xf32>
    %c0_50 = arith.constant 0 : index
    %c0_51 = arith.constant 0 : index
    %62 = vector.load %arg11[%c0_50, %c0_51] : memref<5x10xf32, #tpu.memory_space<vmem>>, vector<5x10xf32>
    %cst_52 = arith.constant dense<0.000000e+00> : vector<5x160xf32>
    %63 = tpu.matmul %62, %59, %cst_52 {dimension_numbers = #tpu.dot_dimension_numbers<[1], [0], [0], [1], [0, 0, 1, 1], [], []>} : vector<5x10xf32>, vector<10x160xf32>, vector<5x160xf32> -> vector<5x160xf32>
    %64 = arith.maximumf %61, %63 : vector<5x160xf32>
    %c0_53 = arith.constant 0 : index
    %c0_54 = arith.constant 0 : index
    %65 = vector.load %arg12[%c0_53, %c0_54] : memref<160x80xf32, #tpu.memory_space<vmem>>, vector<160x80xf32>
    %cst_55 = arith.constant dense<0.000000e+00> : vector<5x80xf32>
    %66 = tpu.matmul %64, %65, %cst_55 {dimension_numbers = #tpu.dot_dimension_numbers<[1], [0], [0], [1], [0, 0, 1, 1], [], []>} : vector<5x160xf32>, vector<160x80xf32>, vector<5x80xf32> -> vector<5x80xf32>
    %c0_56 = arith.constant 0 : index
    %c0_57 = arith.constant 0 : index
    %67 = vector.load %arg13[%c0_56, %c0_57] : memref<160x80xf32, #tpu.memory_space<vmem>>, vector<160x80xf32>
    %cst_58 = arith.constant dense<0.000000e+00> : vector<5x80xf32>
    %68 = tpu.matmul %64, %67, %cst_58 {dimension_numbers = #tpu.dot_dimension_numbers<[1], [0], [0], [1], [0, 0, 1, 1], [], []>} : vector<5x160xf32>, vector<160x80xf32>, vector<5x80xf32> -> vector<5x80xf32>
    %69 = arith.maximumf %66, %68 : vector<5x80xf32>
    %c0_59 = arith.constant 0 : index
    %c0_60 = arith.constant 0 : index
    %70 = vector.load %arg15[%c0_59, %c0_60] : memref<1x128xf32, #tpu.memory_space<vmem>>, vector<1x128xf32>
    %71 = vector.extract_strided_slice %69 {offsets = [0, 0], sizes = [1, 80], strides = [1, 1]} : vector<5x80xf32> to vector<1x80xf32>
    %c0_61 = arith.constant 0 : index
    %c0_62 = arith.constant 0 : index
    %c0_63 = arith.constant 0 : index
    %72 = vector.load %arg14[%c0_61, %c0_62, %c0_63] : memref<5x80x128xf32, #tpu.memory_space<vmem>>, vector<1x80x128xf32>
    %73 = vector.shape_cast %72 : vector<1x80x128xf32> to vector<80x128xf32>
    %cst_64 = arith.constant dense<0.000000e+00> : vector<1x128xf32>
    %74 = tpu.matmul %71, %73, %cst_64 {dimension_numbers = #tpu.dot_dimension_numbers<[1], [0], [0], [1], [0, 0, 1, 1], [], []>} : vector<1x80xf32>, vector<80x128xf32>, vector<1x128xf32> -> vector<1x128xf32>
    %75 = arith.addf %70, %74 : vector<1x128xf32>
    %76 = vector.extract_strided_slice %69 {offsets = [1, 0], sizes = [1, 80], strides = [1, 1]} : vector<5x80xf32> to vector<1x80xf32>
    %c1_65 = arith.constant 1 : index
    %c0_66 = arith.constant 0 : index
    %c0_67 = arith.constant 0 : index
    %77 = vector.load %arg14[%c1_65, %c0_66, %c0_67] : memref<5x80x128xf32, #tpu.memory_space<vmem>>, vector<1x80x128xf32>
    %78 = vector.shape_cast %77 : vector<1x80x128xf32> to vector<80x128xf32>
    %cst_68 = arith.constant dense<0.000000e+00> : vector<1x128xf32>
    %79 = tpu.matmul %76, %78, %cst_68 {dimension_numbers = #tpu.dot_dimension_numbers<[1], [0], [0], [1], [0, 0, 1, 1], [], []>} : vector<1x80xf32>, vector<80x128xf32>, vector<1x128xf32> -> vector<1x128xf32>
    %80 = arith.addf %75, %79 : vector<1x128xf32>
    %81 = vector.extract_strided_slice %69 {offsets = [2, 0], sizes = [1, 80], strides = [1, 1]} : vector<5x80xf32> to vector<1x80xf32>
    %c2_69 = arith.constant 2 : index
    %c0_70 = arith.constant 0 : index
    %c0_71 = arith.constant 0 : index
    %82 = vector.load %arg14[%c2_69, %c0_70, %c0_71] : memref<5x80x128xf32, #tpu.memory_space<vmem>>, vector<1x80x128xf32>
    %83 = vector.shape_cast %82 : vector<1x80x128xf32> to vector<80x128xf32>
    %cst_72 = arith.constant dense<0.000000e+00> : vector<1x128xf32>
    %84 = tpu.matmul %81, %83, %cst_72 {dimension_numbers = #tpu.dot_dimension_numbers<[1], [0], [0], [1], [0, 0, 1, 1], [], []>} : vector<1x80xf32>, vector<80x128xf32>, vector<1x128xf32> -> vector<1x128xf32>
    %85 = arith.addf %80, %84 : vector<1x128xf32>
    %86 = vector.extract_strided_slice %69 {offsets = [3, 0], sizes = [1, 80], strides = [1, 1]} : vector<5x80xf32> to vector<1x80xf32>
    %c3_73 = arith.constant 3 : index
    %c0_74 = arith.constant 0 : index
    %c0_75 = arith.constant 0 : index
    %87 = vector.load %arg14[%c3_73, %c0_74, %c0_75] : memref<5x80x128xf32, #tpu.memory_space<vmem>>, vector<1x80x128xf32>
    %88 = vector.shape_cast %87 : vector<1x80x128xf32> to vector<80x128xf32>
    %cst_76 = arith.constant dense<0.000000e+00> : vector<1x128xf32>
    %89 = tpu.matmul %86, %88, %cst_76 {dimension_numbers = #tpu.dot_dimension_numbers<[1], [0], [0], [1], [0, 0, 1, 1], [], []>} : vector<1x80xf32>, vector<80x128xf32>, vector<1x128xf32> -> vector<1x128xf32>
    %90 = arith.addf %85, %89 : vector<1x128xf32>
    %91 = vector.extract_strided_slice %69 {offsets = [4, 0], sizes = [1, 80], strides = [1, 1]} : vector<5x80xf32> to vector<1x80xf32>
    %c4_77 = arith.constant 4 : index
    %c0_78 = arith.constant 0 : index
    %c0_79 = arith.constant 0 : index
    %92 = vector.load %arg14[%c4_77, %c0_78, %c0_79] : memref<5x80x128xf32, #tpu.memory_space<vmem>>, vector<1x80x128xf32>
    %93 = vector.shape_cast %92 : vector<1x80x128xf32> to vector<80x128xf32>
    %cst_80 = arith.constant dense<0.000000e+00> : vector<1x128xf32>
    %94 = tpu.matmul %91, %93, %cst_80 {dimension_numbers = #tpu.dot_dimension_numbers<[1], [0], [0], [1], [0, 0, 1, 1], [], []>} : vector<1x80xf32>, vector<80x128xf32>, vector<1x128xf32> -> vector<1x128xf32>
    %95 = arith.addf %90, %94 : vector<1x128xf32>
    %c0_81 = arith.constant 0 : index
    %c0_82 = arith.constant 0 : index
    %96 = vector.load %arg16[%c0_81, %c0_82] : memref<128x128xf32, #tpu.memory_space<vmem>>, vector<128x128xf32>
    %cst_83 = arith.constant dense<0.000000e+00> : vector<1x128xf32>
    %97 = tpu.matmul %95, %96, %cst_83 {dimension_numbers = #tpu.dot_dimension_numbers<[1], [0], [0], [1], [0, 0, 1, 1], [], []>} : vector<1x128xf32>, vector<128x128xf32>, vector<1x128xf32> -> vector<1x128xf32>
    %c0_84 = arith.constant 0 : index
    %c0_85 = arith.constant 0 : index
    %98 = vector.load %arg17[%c0_84, %c0_85] : memref<1x128xf32, #tpu.memory_space<vmem>>, vector<1x128xf32>
    %99 = arith.addf %97, %98 : vector<1x128xf32>
    %c0_86 = arith.constant 0 : index
    %c0_87 = arith.constant 0 : index
    %100 = vector.load %arg18[%c0_86, %c0_87] : memref<128x10xf32, #tpu.memory_space<vmem>>, vector<128x10xf32>
    %cst_88 = arith.constant dense<0.000000e+00> : vector<1x10xf32>
    %101 = tpu.matmul %99, %100, %cst_88 {dimension_numbers = #tpu.dot_dimension_numbers<[1], [0], [0], [1], [0, 0, 1, 1], [], []>} : vector<1x128xf32>, vector<128x10xf32>, vector<1x10xf32> -> vector<1x10xf32>
    %c0_89 = arith.constant 0 : index
    %c0_90 = arith.constant 0 : index
    %102 = vector.load %arg19[%c0_89, %c0_90] : memref<1x10xf32, #tpu.memory_space<vmem>>, vector<1x10xf32>
    %103 = arith.addf %101, %102 : vector<1x10xf32>
    %c0_91 = arith.constant 0 : index
    %c0_92 = arith.constant 0 : index
    %c0_93 = arith.constant 0 : index
    %104 = vector.load %arg20[%c0_91, %c0_92, %c0_93] : memref<1x1x10xf32, #tpu.memory_space<vmem>>, vector<1x1x10xf32>
    %105 = vector.shape_cast %104 : vector<1x1x10xf32> to vector<1x10xf32>
    %106 = vector.shape_cast %103 : vector<1x10xf32> to vector<1x1x10xf32>
    tpu.vector_store %arg20[%c0_91, %c0_92, %c0_93], %106 {strides = array<i32>} : memref<1x1x10xf32, #tpu.memory_space<vmem>>, vector<1x1x10xf32>,
    return
  }
  func.func @transform_0(%arg0: i32) -> (i32, i32, i32) {
    %c0_i32 = arith.constant 0 : i32
    %c0_i32_0 = arith.constant 0 : i32
    %c0_i32_1 = arith.constant 0 : i32
    return %arg0, %c0_i32, %c0_i32_0 : i32, i32, i32
  }
  func.func @transform_1(%arg0: i32) -> (i32, i32, i32) {
    %c0_i32 = arith.constant 0 : i32
    %c0_i32_0 = arith.constant 0 : i32
    %c0_i32_1 = arith.constant 0 : i32
    %c0_i32_2 = arith.constant 0 : i32
    return %c0_i32, %c0_i32_0, %c0_i32_1 : i32, i32, i32
  }
  func.func @transform_2(%arg0: i32) -> (i32, i32) {
    %c0_i32 = arith.constant 0 : i32
    %c0_i32_0 = arith.constant 0 : i32
    %c0_i32_1 = arith.constant 0 : i32
    return %c0_i32, %c0_i32_0 : i32, i32
  }
  func.func @transform_3(%arg0: i32) -> (i32, i32) {
    %c0_i32 = arith.constant 0 : i32
    %c0_i32_0 = arith.constant 0 : i32
    %c0_i32_1 = arith.constant 0 : i32
    return %c0_i32, %c0_i32_0 : i32, i32
  }
  func.func @transform_4(%arg0: i32) -> (i32, i32) {
    %c0_i32 = arith.constant 0 : i32
    %c0_i32_0 = arith.constant 0 : i32
    %c0_i32_1 = arith.constant 0 : i32
    return %c0_i32, %c0_i32_0 : i32, i32
  }
  func.func @transform_5(%arg0: i32) -> (i32, i32) {
    %c0_i32 = arith.constant 0 : i32
    %c0_i32_0 = arith.constant 0 : i32
    %c0_i32_1 = arith.constant 0 : i32
    return %c0_i32, %c0_i32_0 : i32, i32
  }
  func.func @transform_6(%arg0: i32) -> (i32, i32) {
    %c0_i32 = arith.constant 0 : i32
    %c0_i32_0 = arith.constant 0 : i32
    %c0_i32_1 = arith.constant 0 : i32
    return %c0_i32, %c0_i32_0 : i32, i32
  }
  func.func @transform_7(%arg0: i32) -> (i32, i32, i32) {
    %c0_i32 = arith.constant 0 : i32
    %c0_i32_0 = arith.constant 0 : i32
    %c0_i32_1 = arith.constant 0 : i32
    %c0_i32_2 = arith.constant 0 : i32
    return %c0_i32, %c0_i32_0, %c0_i32_1 : i32, i32, i32
  }
  func.func @transform_8(%arg0: i32) -> (i32, i32) {
    %c0_i32 = arith.constant 0 : i32
    %c0_i32_0 = arith.constant 0 : i32
    %c0_i32_1 = arith.constant 0 : i32
    return %c0_i32, %c0_i32_0 : i32, i32
  }
  func.func @transform_9(%arg0: i32) -> (i32, i32) {
    %c0_i32 = arith.constant 0 : i32
    %c0_i32_0 = arith.constant 0 : i32
    %c0_i32_1 = arith.constant 0 : i32
    return %c0_i32, %c0_i32_0 : i32, i32
  }
  func.func @transform_10(%arg0: i32) -> (i32, i32) {
    %c0_i32 = arith.constant 0 : i32
    %c0_i32_0 = arith.constant 0 : i32
    %c0_i32_1 = arith.constant 0 : i32
    return %c0_i32, %c0_i32_0 : i32, i32
  }
  func.func @transform_11(%arg0: i32) -> (i32, i32) {
    %c0_i32 = arith.constant 0 : i32
    %c0_i32_0 = arith.constant 0 : i32
    %c0_i32_1 = arith.constant 0 : i32
    return %c0_i32, %c0_i32_0 : i32, i32
  }
  func.func @transform_12(%arg0: i32) -> (i32, i32) {
    %c0_i32 = arith.constant 0 : i32
    %c0_i32_0 = arith.constant 0 : i32
    %c0_i32_1 = arith.constant 0 : i32
    return %c0_i32, %c0_i32_0 : i32, i32
  }
  func.func @transform_13(%arg0: i32) -> (i32, i32, i32) {
    %c0_i32 = arith.constant 0 : i32
    %c0_i32_0 = arith.constant 0 : i32
    %c0_i32_1 = arith.constant 0 : i32
    %c0_i32_2 = arith.constant 0 : i32
    return %c0_i32, %c0_i32_0, %c0_i32_1 : i32, i32, i32
  }
  func.func @transform_14(%arg0: i32) -> (i32, i32) {
    %c0_i32 = arith.constant 0 : i32
    %c0_i32_0 = arith.constant 0 : i32
    %c0_i32_1 = arith.constant 0 : i32
    return %c0_i32, %c0_i32_0 : i32, i32
  }
  func.func @transform_15(%arg0: i32) -> (i32, i32) {
    %c0_i32 = arith.constant 0 : i32
    %c0_i32_0 = arith.constant 0 : i32
    %c0_i32_1 = arith.constant 0 : i32
    return %c0_i32, %c0_i32_0 : i32, i32
  }
  func.func @transform_16(%arg0: i32) -> (i32, i32) {
    %c0_i32 = arith.constant 0 : i32
    %c0_i32_0 = arith.constant 0 : i32
    %c0_i32_1 = arith.constant 0 : i32
    return %c0_i32, %c0_i32_0 : i32, i32
  }
  func.func @transform_17(%arg0: i32) -> (i32, i32) {
    %c0_i32 = arith.constant 0 : i32
    %c0_i32_0 = arith.constant 0 : i32
    %c0_i32_1 = arith.constant 0 : i32
    return %c0_i32, %c0_i32_0 : i32, i32
  }
  func.func @transform_18(%arg0: i32) -> (i32, i32) {
    %c0_i32 = arith.constant 0 : i32
    %c0_i32_0 = arith.constant 0 : i32
    %c0_i32_1 = arith.constant 0 : i32
    return %c0_i32, %c0_i32_0 : i32, i32
  }
  func.func @transform_19(%arg0: i32) -> (i32, i32, i32) {
    %c0_i32 = arith.constant 0 : i32
    %c0_i32_0 = arith.constant 0 : i32
    %c0_i32_1 = arith.constant 0 : i32
    return %arg0, %c0_i32, %c0_i32_0 : i32, i32, i32
  }
}

</mosaic_0001>

<bundles_post_ra>
// kernel: cnn_forward.1
= control target key start
LH: loop header
LB: loop body
LE: loop exit
PB: predicated region body
PF: predicated region fallthrough
CT: control target
= control target key end

     0   :  { %s5439_s0 = inlined_call_operand.vmem [shape: f32[2,30,30], index: 0, kind: input, shape index: {}]   ;;  %s5440_s1 = inlined_call_operand.vmem [shape: f32[3,30,168], index: 1, kind: input, shape index: {}]   ;;  %s5441_s2 = inlined_call_operand.vmem [shape: f32[1,168], index: 2, kind: input, shape index: {}]   ;;  %s5442_s3 = inlined_call_operand.vmem [shape: f32[14,28], index: 3, kind: input, shape index: {}]   ;;  %s5443_s4 = inlined_call_operand.vmem [shape: f32[14,28], index: 4, kind: input, shape index: {}]   ;;  %s5444_s5 = inlined_call_operand.vmem [shape: f32[168,84], index: 5, kind: input, shape index: {}]   ;;  %s5445_s6 = inlined_call_operand.vmem [shape: f32[168,84], index: 6, kind: input, shape index: {}]   ;;  %s5446_s7 = inlined_call_operand.vmem [shape: f32[5,84,160], index: 7, kind: input, shape index: {}]   ;;  %s5447_s8 = inlined_call_operand.vmem [shape: f32[1,160], index: 8, kind: input, shape index: {}]   ;;  %s5448_s9 = inlined_call_operand.vmem [shape: f32[5,10], index: 9, kind: input, shape index: {}]   ;;  %s5449_s10 = inlined_call_operand.vmem [shape: f32[5,10], index: 10, kind: input, shape index: {}]   ;;  %s5450_s11 = inlined_call_operand.vmem [shape: f32[160,80], index: 11, kind: input, shape index: {}]   ;;  %s5451_s12 = inlined_call_operand.vmem [shape: f32[160,80], index: 12, kind: input, shape index: {}]   ;;  %s5452_s13 = inlined_call_operand.vmem [shape: f32[5,80,128], index: 13, kind: input, shape index: {}]   ;;  %s5453_s14 = inlined_call_operand.vmem [shape: f32[1,128], index: 14, kind: input, shape index: {}]   ;;  %s5454_s15 = inlined_call_operand.vmem [shape: f32[128,128], index: 15, kind: input, shape index: {}]   ;;  %s5455_s16 = inlined_call_operand.vmem [shape: f32[1,128], index: 16, kind: input, shape index: {}]   ;;  %s5456_s17 = inlined_call_operand.vmem [shape: f32[128,10], index: 17, kind: input, shape index: {}]   ;;  %s5457_s18 = inlined_call_operand.vmem [shape: f32[1,10], index: 18, kind: input, shape index: {}]   ;;  %s5458_s19 = inlined_call_operand.hbm [shape: f32[2,1,10], index: 19, kind: output, shape index: {}]  }
   0x1   :  { %5468 = sst [smem:[#allocation11_spill]] %s5439_s0 }
   0x2   :  { %5469 = sst [smem:[#allocation12_spill]] %s5440_s1 }
   0x3   :  { %5470 = sst [smem:[#allocation13_spill]] %s5441_s2 }
   0x4   :  { %5471 = sst [smem:[#allocation14_spill]] %s5442_s3 }
   0x5   :  { %5472 = sst [smem:[#allocation15_spill]] %s5457_s18 }
   0x6   :  { %5473 = sst [smem:[#allocation16_spill]] %s5458_s19 }
   0x7   :  { %24 = vsyncpa [#allocation3], 0 }
   0x8   :  { %26 = vsyncpa [#allocation3 + $0x1], 0  ;;  %s4143_s0 = smov 0   ;;  %s4145_s30 = smov 0  }
   0x9   :  { %s4147_s20 = smov 0   ;;  %s4149_s21 = smov 0  }
   0xa LB: > { %5474 = sst [smem:[#allocation5_spill]] %s4024_s0  ;;  %s4164_s1 = sadd.s32 4294967295, %s4036_s21   ;;  %s4036_s21 = sphi %s4149_s21, %s5493_s21   ;;  %s4032_s20 = sphi %s4147_s20, %s5495_s20   ;;  %s4028_s30 = sphi %s4145_s30, %s5497_s30   ;;  %s4024_s0 = sphi %s4143_s0, %s5496_s0  }
   0xb   : > { %5475 = sst [smem:[#allocation6_spill]] %s4032_s20  ;;  %s2991_s22 = sadd.s32 4294967294, %s4036_s21  }
   0xc   : > { %5476 = sst [smem:[#allocation7_spill]] %s4036_s21  ;;  %s4168_s2 = sadd.s32 1, %s4036_s21  }
   0xd   : > { %5477 = sst [smem:[#allocation8_spill]] %s4168_s2  ;;  %s443_s23 = sadd.s32 1, %s4032_s20 }
   0xe   : > { %s440_s24 = ssub.s32 %s4036_s21, %s4168_s2  ;;  %p453_p0 = scmp.ne.s32.totalorder %s4032_s20, %s4028_s30 }
   0xf   : > { %p441_p1 = scmp.eq.s32.totalorder %s440_s24, 0  ;;  %p454_p2 = scmp.eq.s32.totalorder %s4164_s1, 1 }
  0x10   : > { %p459_p3 = scmp.ne.s32.totalorder %s4028_s30, %s4024_s0  ;;  %p460_p4 = scmp.eq.s32.totalorder %s2991_s22, 1 }
  0x11   : > { %s4179_s25 = scalar_select %p441_p1, %s4032_s20, %s443_s23  }
  0x12   : > { %p4181_p5 = por %p454_p2, %p453_p0  ;;  %p4185_p6 = por %p460_p4, %p459_p3 }
  0x13   : > { %5478 = sst [smem:[#allocation9_spill]] %s4179_s25  ;;  %p2994_p7 = scmp.ge.s32.totalorder %s4036_s21, 1 }
  0x14   : > { %s5480_s26 = scalar_select %p4185_p6, 1, 0 }
  0x15   : > { %p540_p8 = scmp.lt.s32.totalorder %s4036_s21, 3 }
  0x16   : > { %5481 = sst [smem:[#allocation10_spill]] %s5480_s26 }
  0x17   : > { %p541_p9 = pnand %p2994_p7, %p540_p8 }
  0x18   : > { %s5482_s29 = sld [smem:[#allocation12_spill]] (!%p541_p9)  ;;  %vm642_vm0 = vcmask (!%p541_p9), 1045504   ;;  %v4038_v7 = vmov (!%p541_p9), 0.0   ;;  %p595_p10 = scmp.lt.s32.totalorder (!%p541_p9), %s4164_s1, 1  ;;  %vm4039_vm1 = vmmov (!%p541_p9), 1   ;;  %vm625_vm3 = vcmask (!%p541_p9), 1046528  }
  0x19   : > { %544 = sbr.rel (%p541_p9) target bundleno = 2254 (0x8ce), region = 96  ;;  %713 = vmatprep.mubr.f32.mxu0 (!%p541_p9), %v4038_v7  ;;  %725 = vmatprep.mubr.f32.mxu1 (!%p541_p9), %v4038_v7  ;;  %vm4214_vm2 = vmpackc.low (!%p541_p9), %vm642_vm0, %vm4039_vm1  ;;  %s5485_s24 = sld [smem:[#allocation11_spill]] (!%p541_p9)  ;;  %vm633_vm4 = vcmask (!%p541_p9), 244736   ;;  %v1281_v56 = vld [vmem:[%s5445_s6] sm:$0xff] (!%p541_p9)  ;;  %v4040_v57 = vmov (!%p541_p9), 0.0|0.0   ;;  %v1282_v58 = vld [vmem:[%s5445_s6 + $0x8] sm:$0xff] (!%p541_p9) }
  0x1a   : > { %v3563_v59 = vpack.c.bf16 (!%p541_p9), %v1282_v58, %v1281_v56  ;;  %v1283_v60 = vld [vmem:[%s5445_s6 + $0x10] sm:$0xff] (!%p541_p9)  ;;  %v1284_v61 = vld [vmem:[%s5445_s6 + $0x18] sm:$0xff] (!%p541_p9)  ;;  %v1285_v63 = vld [vmem:[%s5445_s6 + $0x20] sm:$0xff] (!%p541_p9)  ;;  %vm1005_vm5 = vcmask (!%p541_p9), 1043456   ;;  %s5487_s19 = sld [smem:[#allocation14_spill]] (!%p541_p9)  ;;  %vm998_vm7 = vcmask (!%p541_p9), 228352  }
  0x1b   : > { %v3566_v62 = vpack.c.bf16 (!%p541_p9), %v1284_v61, %v1283_v60  ;;  %v1292_v10 = vld [vmem:[%s5445_s6 + $0x58] sm:$0xff] (!%p541_p9)  ;;  %vm3517_vm6 = vmpackc.low (!%p541_p9), %vm1005_vm5, %vm4039_vm1  ;;  %v1178_v61 = vld [vmem:[%s5444_s5] sm:$0xff] (!%p541_p9)  ;;  %vm1199_vm8 = vcmask (!%p541_p9), 326656   ;;  %vm1429_vm9 = vcmask (!%p541_p9), 687104   ;;  %vm1744_vm10 = vcmask (!%p541_p9), 1044480   ;;  %s5488_s18 = sld [smem:[#allocation15_spill]] (!%p541_p9) }
  0x1c   : > { %vm1981_vm11 = vcmask (!%p541_p9), 1041408   ;;  %vm1977_vm13 = vcmask (!%p541_p9), 80896   ;;  %vm2156_vm14 = vcmask (!%p541_p9), 261120   ;;  %vm4041_vm15 = vmmov (!%p541_p9), 0   ;;  %s3204_s21 = sshll.u32 (!%p541_p9), %s4164_s1, 4  ;;  %s5489_s25 = sld [smem:[#allocation16_spill]] (!%p541_p9) }
  0x1d   : > { %vm3693_vm12 = vmpackc.low (!%p541_p9), %vm1981_vm11, %vm4039_vm1  ;;  %vm2921_vm1 = vcmask (!%p541_p9), 73728  }
  0x1e   : > { %v2998_v0 = vld [vmem:[%s5482_s29 + $0x48] sm:$0xff] (!%p541_p9)  ;;  %v3000_v1 = vld [vmem:[%s5482_s29 + $0x58] sm:$0xff] (!%p541_p9)  ;;  %v2997_v2 = vld [vmem:[%s5482_s29 + $0x40] sm:$0xff] (!%p541_p9) }
  0x1f   : > { %v3482_v3 = vpack.c.bf16 (!%p541_p9), %v3000_v1, %v2998_v0  ;;  %v2999_v4 = vld [vmem:[%s5482_s29 + $0x50] sm:$0xff] (!%p541_p9)  ;;  %v3002_v5 = vld [vmem:[%s5482_s29 + $0x68] sm:$0xff] (!%p541_p9)  ;;  %v3004_v6 = vld [vmem:[%s5482_s29 + $0x78] sm:$0x3f] (!%p541_p9) }
  0x20   : > { %v3484_v8 = vpack.c.bf16 %v2999_v4, %v2997_v2  ;;  %v3486_v9 = vpack.c.bf16 %v3004_v6, %v3002_v5  ;;  %v3001_v11 = vld [vmem:[%s5482_s29 + $0x60] sm:$0xff]  ;;  %v3003_v12 = vld [vmem:[%s5482_s29 + $0x70] sm:$0x3f]  ;;  %s596_s26 = scalar_select %p595_p10, %s4164_s1, 1  ;;  %v605_v13 = vld [vmem:[%s5482_s29 + $0x8] sm:$0xff] }
  0x21   : > { %3483 = vmatprep.subr.bf16.mxu0 %v3482_v3  ;;  %v607_v14 = vld [vmem:[%s5482_s29 + $0x18] sm:$0xff]  ;;  %3887 = vmatprep.subr.bf16.mxu1 %v3482_v3  ;;  %v3489_v15 = vpack.c.bf16 %v3003_v12, %v3001_v11  ;;  %v604_v17 = vld [vmem:[%s5482_s29] sm:$0xff]  ;;  %v606_v18 = vld [vmem:[%s5482_s29 + $0x10] sm:$0xff]  ;;  %s4042_s1 = smov [#allocation2]  }
  0x22   : > { %3485 = vmatpush1.bf16.msra.mxu0 %v3484_v8  ;;  %3889 = vmatpush1.bf16.msra.mxu1 %v3484_v8  ;;  %s3207_s28 = sshll.u32 %s596_s26, 5  ;;  %v3492_v16 = vpack.c.bf16 %v607_v14, %v605_v13  ;;  %v609_v19 = vld [vmem:[%s5482_s29 + $0x28] sm:$0xff]  ;;  %v611_v20 = vld [vmem:[%s5482_s29 + $0x38] sm:$0x3f]  ;;  %v3494_v26 = vpack.c.bf16 %v606_v18, %v604_v17  ;;  %v608_v30 = vld [vmem:[%s5482_s29 + $0x20] sm:$0xff]  ;;  %s5397_s22 = scalar_lea.hbm %s5489_s25, %s3204_s21 }
  0x23   : > { %3488 = vmatprep.subr.msk.bf16.mxu0 %vm4214_vm2, %v3486_v9  ;;  %3888 = vmatprep.subr.msk.bf16.mxu1 %vm4214_vm2, %v3486_v9  ;;  %s599_s27 = scalar_lea.vmem %s5485_s24, %s3207_s28  ;;  %v3496_v29 = vpack.c.bf16 %v611_v20, %v609_v19  ;;  %v610_v31 = vld [vmem:[%s5482_s29 + $0x30] sm:$0x3f]  ;;  %v3018_v34 = vld [vmem:[%s5482_s29 + $0x88] sm:$0xff]  ;;  %v3020_v35 = vld [vmem:[%s5482_s29 + $0x98] sm:$0xff]  ;;  %v970_v19 = vlaneseq  ;;  %s593_s24 = sand.u32 1, %s4028_s30  }
  0x24   : > { %v600_v21 = vld [vmem:[%s599_s27] sm:$0xff]  ;;  %v4250_v22 = vld [vmem:[%s599_s27 + $0x8] sm:$0xff]  ;;  %v4252_v23 = vld [vmem:[%s599_s27 + $0x10] sm:$0xff]  ;;  %v3499_v38 = vpack.c.bf16 %v610_v31, %v608_v30  ;;  %v3502_v39 = vpack.c.bf16 %v3020_v35, %v3018_v34  ;;  %s594_s28 = scalar_lea.vmem [#allocation2], %s593_s24  ;;  %s2924_s23 = scalar_lea.sflag [#allocation3], %s593_s24 }
  0x25   : > { %v626_v24 = vrot.slane %v600_v21, 1  ;;  %v627_v25 = vrot.slane %v4250_v22, 1  ;;  %v603_v27 = vld [vmem:[%s599_s27 + $0x18] sm:$0x3f]  ;;  %v629_v28 = vrot.slane %v4252_v23, 1  ;;  %v3017_v40 = vld [vmem:[%s5482_s29 + $0x80] sm:$0xff] }
  0x26   : > { %3491 = vmatpush1.bf16.msk.msra.mxu0 %vm4214_vm2, %v3489_v15  ;;  %3890 = vmatpush1.bf16.msk.msra.mxu1 %vm4214_vm2, %v3489_v15  ;;  %v631_v32 = vrot.slane %v603_v27, 1  ;;  %v3019_v41 = vld [vmem:[%s5482_s29 + $0x90] sm:$0xff]  ;;  %v3022_v42 = vld [vmem:[%s5482_s29 + $0xa8] sm:$0xff]  ;;  %v3024_v43 = vld [vmem:[%s5482_s29 + $0xb8] sm:$0x3f]  ;;  %v850_v49 = vrot.slane %v600_v21, 2 }
  0x27   : > { %3493 = vmatprep.subr.bf16.mxu0 %v3492_v16  ;;  %v628_v33 = vsel %vm625_vm3, %v626_v24, %v627_v25  ;;  %v630_v37 = vsel %vm625_vm3, %v627_v25, %v629_v28  ;;  %v3504_v44 = vpack.c.bf16 %v3019_v41, %v3017_v40  ;;  %v3506_v45 = vpack.c.bf16 %v3024_v43, %v3022_v42  ;;  %v3021_v46 = vld [vmem:[%s5482_s29 + $0xa0] sm:$0xff]  ;;  %v3023_v47 = vld [vmem:[%s5482_s29 + $0xb0] sm:$0x3f]  ;;  %v1286_v0 = vld [vmem:[%s5445_s6 + $0x28] sm:$0xff]  ;;  %s5486_s27 = sld [smem:[#allocation13_spill]]  ;;  %s2936_s0 = sshll.u32 %s594_s28, 4  ;;  %s5399_s0 = int_to_ptr.vmem [resolvable:$true] %s2936_s0 }
  0x28   : > { %v632_v36 = vsel %vm625_vm3, %v629_v28, %v631_v32  ;;  %v3509_v48 = vpack.c.bf16 %v3023_v47, %v3021_v46  ;;  %v851_v50 = vrot.slane %v4250_v22, 2  ;;  %v853_v52 = vrot.slane %v4252_v23, 2  ;;  %v1287_v2 = vld [vmem:[%s5445_s6 + $0x30] sm:$0xff]  ;;  %v1288_v3 = vld [vmem:[%s5445_s6 + $0x38] sm:$0xff]  ;;  %v1289_v5 = vld [vmem:[%s5445_s6 + $0x40] sm:$0xff]  ;;  %s3978_s26 = sshll.u32 %s4042_s1, 4  ;;  %s3979_s26 = int_to_ptr.vmem [resolvable:$false] %s3978_s26 }
  0x29   : > { %3007 = vmatmul.mubr.msk.f32.vlgmr.msra.gmra.mrb[0].mxu0 %vm633_vm4, %v628_v33  ;;  %3009 = vmatmul.mubr.msk.f32.vlgmr.msra.gmra.mrb[0].mxu1 %vm633_vm4, %v632_v36  ;;  %v855_v53 = vrot.slane %v603_v27, 2  ;;  %v3569_v1 = vpack.c.bf16 %v1286_v0, %v1285_v63  ;;  %v3572_v4 = vpack.c.bf16 %v1288_v3, %v1287_v2  ;;  %v1290_v6 = vld [vmem:[%s5445_s6 + $0x48] sm:$0xff]  ;;  %v1291_v9 = vld [vmem:[%s5445_s6 + $0x50] sm:$0xff]  ;;  %v1293_v12 = vld [vmem:[%s5445_s6 + $0x60] sm:$0xff]  ;;  %v4381_v20 = vshrl.u32 %v970_v19, 7  ;;  %p3981_p0 = scmp.lt.s32.totalorder %s5399_s0, %s3979_s26 }
  0x2a   : > { %3495 = vmatpush1.bf16.msra.mxu0 %v3494_v26  ;;  %719 = vmatprep.mubr.f32.mxu0 %v4038_v7  ;;  %v852_v51 = vsel %vm642_vm0, %v850_v49, %v851_v50  ;;  %v854_v54 = vsel %vm642_vm0, %v851_v50, %v853_v52  ;;  %v3575_v8 = vpack.c.bf16 %v1290_v6, %v1289_v5  ;;  %v1294_v13 = vld [vmem:[%s5445_s6 + $0x68] sm:$0xff]  ;;  %v1089_v63 = vld [vmem:[%s5443_s4] sm:$0xff]  ;;  %v1181_v2 = vld [vmem:[%s5444_s5 + $0x18] sm:$0xff] }
  0x2b   : > { %3498 = vmatprep.subr.msk.bf16.mxu0 %vm4214_vm2, %v3496_v29  ;;  %731 = vmatprep.mubr.f32.mxu1 %v4038_v7  ;;  %v856_v55 = vsel %vm642_vm0, %v853_v52, %v855_v53  ;;  %v3578_v11 = vpack.c.bf16 %v1292_v10, %v1291_v9  ;;  %v3581_v14 = vpack.c.bf16 %v1294_v13, %v1293_v12  ;;  %v997_v60 = vld [vmem:[%s5487_s19 + $0x8] sm:$0x3f]  ;;  %v1182_v5 = vld [vmem:[%s5444_s5 + $0x20] sm:$0xff]  ;;  %v1184_v9 = vld [vmem:[%s5444_s5 + $0x30] sm:$0xff] }
  0x2c   : > { %v1090_v3 = vld [vmem:[%s5443_s4 + $0x8] sm:$0x3f]  ;;  %v1185_v10 = vld [vmem:[%s5444_s5 + $0x38] sm:$0xff]  ;;  %v1186_v12 = vld [vmem:[%s5444_s5 + $0x40] sm:$0xff] }
  0x2d   : > { %3008 = vmatmul.mubr.msk.f32.gmra.mrb[2].mxu0 %vm633_vm4, %v630_v37  ;;  %3010 = vmatmul.mubr.msk.f32.gmra.mrb[2].mxu1 %vm633_vm4, %v631_v32  ;;  %v1183_v6 = vld [vmem:[%s5444_s5 + $0x28] sm:$0xff] }
  0x2e   : > { %3501 = vmatpush1.bf16.msk.msra.mxu0 %vm4214_vm2, %v3499_v38  ;;  %816 = vmatprep.mubr.f32.mxu0 %v4038_v7  ;;  %v1187_v13 = vld [vmem:[%s5444_s5 + $0x48] sm:$0xff] }
  0x2f   : > { %3503 = vmatprep.subr.bf16.mxu0 %v3502_v39  ;;  %1076 = vmatprep.mubr.f32.mxu1 %v4038_v7  ;;  %v1191_v19 = vld [vmem:[%s5444_s5 + $0x68] sm:$0xff] }
  0x31   : > { %3013 = vmatmul.mubr.msk.f32.vlgmr.msra.gmra.mrb[0].mxu0 %vm633_vm4, %v600_v21  ;;  %v972_v21 = vsub.s32 0, %v4381_v20 }
  0x32   : > { %822 = vmatprep.mubr.f32.mxu0 %v4038_v7  ;;  %3505 = vmatpush1.bf16.msra.mxu0 %v3504_v44 }
  0x33   : > { %3508 = vmatprep.subr.msk.bf16.mxu0 %vm4214_vm2, %v3506_v45 }
  0x35   : > { %3014 = vmatmul.mubr.msk.f32.gmra.mrb[2].mxu0 %vm633_vm4, %v4250_v22  ;;  %v968_v22 = vld [vmem:[%s5486_s27] sm:$0x3]  ;;  %s3974_s27 = scalar_lea.vmem %s5399_s0, 16 }
  0x36   : > { %828 = vmatprep.mubr.f32.mxu0 %v4038_v7  ;;  %3511 = vmatpush1.bf16.msk.msra.mxu0 %vm4214_vm2, %v3509_v48  ;;  %v973_v24 = vrot.slane %v968_v22, %v972_v21  ;;  %p3975_p11 = scmp.ne.s32.totalorder %s5399_s0, %s3974_s27 }
  0x37   : > { %3562 = vmatprep.subr.bf16.mxu0 %v4040_v57 }
  0x38   : > { %p3976_p12 = pnand %p3975_p11, %p4181_p5 }
  0x39   : > { %3015 = vmatmul.mubr.msk.f32.gmra.mrb[4].mxu0 %vm633_vm4, %v4252_v23  ;;  %v976_v23 = vsub.s32 1, %v4381_v20  ;;  %v1976_v20 = vld [vmem:[%s5448_s9] sm:$0x1f] }
  0x3a   : > { %834 = vmatprep.mubr.f32.mxu0 %v4038_v7  ;;  %p3977_p13 = pneg %p3976_p12 }
  0x3b   : > { %v977_v26 = vrot.slane %v968_v22, %v976_v23 }
  0x3d   : > { %3016 = vmatmul.mubr.msk.f32.gmra.mrb[6].mxu0 %vm633_vm4, %v603_v27 }
  0x3e   : > { %935 = vmatprep.mubr.f32.mxu0 %v4038_v7 }
  0x41   : > { %3027 = vmatmul.mubr.msk.f32.vlgmr.msra.gmra.mrb[0].mxu0 %vm633_vm4, %v852_v51 }
  0x42   : > { %941 = vmatprep.mubr.f32.mxu0 %v4038_v7  ;;  %3564 = vmatpush1.bf16.msra.mxu0 %v3563_v59  ;;  %v996_v59 = vld [vmem:[%s5487_s19] sm:$0xff] }
  0x43   : > { %3565 = vmatprep.subr.bf16.mxu0 %v4040_v57 }
  0x45   : > { %3028 = vmatmul.mubr.msk.f32.gmra.mrb[2].mxu0 %vm633_vm4, %v854_v54 }
  0x46   : > { %947 = vmatprep.mubr.f32.mxu0 %v4038_v7  ;;  %3567 = vmatpush1.bf16.msra.mxu0 %v3566_v62  ;;  %v1179_v62 = vld [vmem:[%s5444_s5 + $0x8] sm:$0xff] }
  0x47   : > { %3568 = vmatprep.subr.bf16.mxu0 %v4040_v57  ;;  %v3533_v0 = vpack.c.bf16 %v1179_v62, %v1178_v61  ;;  %v3047_v62 = vld [vmem:[%s5446_s7 + $0xd0] sm:$0xff] }
  0x49   : > { %3029 = vmatmul.mubr.msk.f32.gmra.mrb[4].mxu0 %vm633_vm4, %v856_v55 }
  0x4a   : > { %953 = vmatprep.mubr.f32.mxu0 %v4038_v7  ;;  %3570 = vmatpush1.bf16.msra.mxu0 %v3569_v1  ;;  %v1180_v1 = vld [vmem:[%s5444_s5 + $0x10] sm:$0xff] }
  0x4b   : > { %3571 = vmatprep.subr.bf16.mxu0 %v4040_v57 }
  0x4d   : > { %3030 = vmatmul.mubr.msk.f32.gmra.mrb[6].mxu0 %vm633_vm4, %v855_v53 }
  0x4e   : > { %3573 = vmatpush1.bf16.msra.mxu0 %v3572_v4  ;;  %v3536_v4 = vpack.c.bf16 %v1181_v2, %v1180_v1  ;;  %v3052_v1 = vld [vmem:[%s5446_s7 + $0xf8] sm:$0xff]  ;;  %v3054_v2 = vld [vmem:[%s5446_s7 + $0x108] sm:$0xff] }
  0x4f   : > { %3574 = vmatprep.subr.bf16.mxu0 %v4040_v57 }
  0x52   : > { %3576 = vmatpush1.bf16.msra.mxu0 %v3575_v8  ;;  %v3539_v8 = vpack.c.bf16 %v1183_v6, %v1182_v5 }
  0x53   : > { %3577 = vmatprep.subr.bf16.mxu0 %v4040_v57 }
  0x56   : > { %3579 = vmatpush1.bf16.msra.mxu0 %v3578_v11  ;;  %v3542_v11 = vpack.c.bf16 %v1185_v10, %v1184_v9  ;;  %v3051_v9 = vld [vmem:[%s5446_s7 + $0xf0] sm:$0xff]  ;;  %v3053_v10 = vld [vmem:[%s5446_s7 + $0x100] sm:$0xff] }
  0x57   : > { %3580 = vmatprep.subr.bf16.mxu0 %v4040_v57 }
  0x5a   : > { %3582 = vmatpush1.bf16.msra.mxu0 %v3581_v14  ;;  %v3545_v14 = vpack.c.bf16 %v1187_v13, %v1186_v12  ;;  %v3058_v12 = vld [vmem:[%s5446_s7 + $0x128] sm:$0xff]  ;;  %v3602_v13 = vpack.c.bf16 %v3053_v10, %v3051_v9  ;;  %v1391_v10 = vld [vmem:[%s5446_s7 + $0x60] sm:$0xff] }
  0x5b   : > { %3583 = vmatprep.subr.bf16.mxu0 %v4040_v57 }
  0xfc   : > { %v727_v15 = vpop.f32.mrb[0].mxu1 }
  0xfd   : > { %v729_v16 = vpop.f32.mrb[1].mxu1 }
 0x100   : > { %v733_v17 = vpop.f32.mrb[2].mxu1 }
 0x101   : > { %v735_v18 = vpop.f32.mrb[3].mxu1 }
 0x114   : > { %v937_v25 = vpop.f32.mrb[0].mxu0 }
 0x115   : > { %v939_v27 = vpop.f32.mrb[1].mxu0  ;;  %v980_v28 = vadd.f32 %v973_v24, %v937_v25  ;;  %v1193_v25 = vld [vmem:[%s5444_s5 + $0x78] sm:$0xff] }
 0x116   : > { %v981_v29 = vadd.f32 %v977_v26, %v939_v27 }
 0x117   : > { %v988_v34 = vmax.f32 %v980_v28, 0.0  ;;  %v1296_v28 = vld [vmem:[%s5445_s6 + $0x78] sm:$0xff] }
 0x118   : > { %v943_v30 = vpop.f32.mrb[2].mxu0  ;;  %v989_v36 = vmax.f32 %v981_v29, 0.0 }
 0x119   : > { %v982_v31 = vadd.f32 %v973_v24, %v943_v30  ;;  %v945_v32 = vpop.f32.mrb[3].mxu0  ;;  %v1194_v30 = vld [vmem:[%s5444_s5 + $0x80] sm:$0xff] }
 0x11a   : > { %v983_v33 = vadd.f32 %v977_v26, %v945_v32  ;;  %v1297_v32 = vld [vmem:[%s5445_s6 + $0x80] sm:$0xff] }
 0x11b   : > { %v990_v35 = vmax.f32 %v982_v31, 0.0  ;;  %v1195_v31 = vld [vmem:[%s5444_s5 + $0x88] sm:$0xff] }
 0x11c   : > { %v991_v37 = vmax.f32 %v983_v33, 0.0  ;;  %v949_v38 = vpop.f32.mrb[4].mxu0  ;;  %v3557_v33 = vpack.c.bf16 %v1195_v31, %v1194_v30  ;;  %v1382_v30 = vld [vmem:[%s5446_s7 + $0x18] sm:$0xff] }
 0x11d   : > { %v3514_v39 = vpack.c.bf16 %v990_v35, %v988_v34  ;;  %v3891_v40 = vadd.f32 %v949_v38, %v727_v15  ;;  %v951_v41 = vpop.f32.mrb[5].mxu0  ;;  %v1188_v15 = vld [vmem:[%s5444_s5 + $0x50] sm:$0xff]  ;;  %v1298_v34 = vld [vmem:[%s5445_s6 + $0x88] sm:$0xff] }
 0x11e   : > { %v3512_v42 = vpack.c.bf16 %v991_v37, %v989_v36  ;;  %v3892_v43 = vadd.f32 %v951_v41, %v729_v16  ;;  %v1189_v16 = vld [vmem:[%s5444_s5 + $0x58] sm:$0xff]  ;;  %v3587_v35 = vpack.c.bf16 %v1298_v34, %v1297_v32  ;;  %v1196_v36 = vld [vmem:[%s5444_s5 + $0x90] sm:$0xff] }
 0x11f   : > { %v984_v45 = vadd.f32 %v3891_v40, %v973_v24  ;;  %v1197_v37 = vld [vmem:[%s5444_s5 + $0x98] sm:$0xff]  ;;  %v1299_v38 = vld [vmem:[%s5445_s6 + $0x90] sm:$0xff] }
 0x120   : > { %v955_v44 = vpop.f32.mrb[6].mxu0  ;;  %3513 = vmatprep.subr.bf16.mxu1 %v3512_v42  ;;  %v985_v48 = vadd.f32 %v3892_v43, %v977_v26  ;;  %v1300_v40 = vld [vmem:[%s5445_s6 + $0x98] sm:$0xff]  ;;  %v1301_v43 = vld [vmem:[%s5445_s6 + $0xa0] sm:$0xff] }
 0x121   : > { %v3893_v46 = vadd.f32 %v955_v44, %v733_v17  ;;  %v957_v47 = vpop.f32.mrb[7].mxu0  ;;  %3515 = vmatpush1.bf16.msra.mxu1 %v3514_v39  ;;  %v992_v52 = vmax.f32 %v984_v45, 0.0  ;;  %v3548_v17 = vpack.c.bf16 %v1189_v16, %v1188_v15  ;;  %v3590_v41 = vpack.c.bf16 %v1300_v40, %v1299_v38  ;;  %v3044_v44 = vld [vmem:[%s5446_s7 + $0xb8] sm:$0xff]  ;;  %v3046_v45 = vld [vmem:[%s5446_s7 + $0xc8] sm:$0xff]  ;;  %v3055_v15 = vld [vmem:[%s5446_s7 + $0x110] sm:$0xff] }
 0x122   : > { %v3894_v49 = vadd.f32 %v957_v47, %v735_v18  ;;  %v993_v54 = vmax.f32 %v985_v48, 0.0  ;;  %v1190_v18 = vld [vmem:[%s5444_s5 + $0x60] sm:$0xff]  ;;  %v1381_v38 = vld [vmem:[%s5446_s7 + $0x10] sm:$0xff] }
 0x123   : > { %v986_v50 = vadd.f32 %v3893_v46, %v973_v24  ;;  %v3551_v22 = vpack.c.bf16 %v1191_v19, %v1190_v18  ;;  %v1192_v24 = vld [vmem:[%s5444_s5 + $0x70] sm:$0xff]  ;;  %v3592_v46 = vpack.c.bf16 %v3046_v45, %v3044_v44  ;;  %v3057_v16 = vld [vmem:[%s5446_s7 + $0x120] sm:$0xff]  ;;  %v3060_v18 = vld [vmem:[%s5446_s7 + $0x138] sm:$0xff] }
 0x124   : > { %v987_v51 = vadd.f32 %v3894_v49, %v977_v26  ;;  %v1295_v26 = vld [vmem:[%s5445_s6 + $0x70] sm:$0xff]  ;;  %v3554_v27 = vpack.c.bf16 %v1193_v25, %v1192_v24  ;;  %v3062_v19 = vld [vmem:[%s5446_s7 + $0x148] sm:$0xff]  ;;  %v3061_v25 = vld [vmem:[%s5446_s7 + $0x140] sm:$0xff] }
 0x125   : > { %v994_v53 = vmax.f32 %v986_v50, 0.0  ;;  %v3584_v29 = vpack.c.bf16 %v1296_v28, %v1295_v26  ;;  %v3059_v24 = vld [vmem:[%s5446_s7 + $0x130] sm:$0xff]  ;;  %v1384_v45 = vld [vmem:[%s5446_s7 + $0x28] sm:$0xff] }
 0x126   : > { %v995_v55 = vmax.f32 %v987_v51, 0.0  ;;  %v3043_v51 = vld [vmem:[%s5446_s7 + $0xb0] sm:$0xff]  ;;  %v3610_v26 = vpack.c.bf16 %v3061_v25, %v3059_v24  ;;  %v3076_v24 = vld [vmem:[%s5446_s7 + $0x178] sm:$0xff]  ;;  %v3073_v25 = vld [vmem:[%s5446_s7 + $0x160] sm:$0xff] }
 0x127   : > { %v3519_v56 = vpack.c.bf16 %v994_v53, %v992_v52  ;;  %3585 = vmatpush1.bf16.msra.mxu0 %v3584_v29  ;;  %v3045_v52 = vld [vmem:[%s5446_s7 + $0xc0] sm:$0xff]  ;;  %v3063_v28 = vld [vmem:[%s5446_s7 + $0x150] sm:$0xf]  ;;  %v1380_v29 = vld [vmem:[%s5446_s7 + $0x8] sm:$0xff] }
 0x128   : > { %v3516_v58 = vpack.c.bf16 %v995_v55, %v993_v54  ;;  %3586 = vmatprep.subr.bf16.mxu0 %v4040_v57  ;;  %v3048_v54 = vld [vmem:[%s5446_s7 + $0xd8] sm:$0xff]  ;;  %v3050_v55 = vld [vmem:[%s5446_s7 + $0xe8] sm:$0xff]  ;;  %v3612_v31 = vpack.c.bf16 %v1382_v30, %v1380_v29  ;;  %v1399_v29 = vld [vmem:[%s5446_s7 + $0xa0] sm:$0xf] }
 0x129   : > { %v3596_v61 = vpack.c.bf16 %v3050_v55, %v3048_v54 }
 0x12a   : > { %3518 = vmatprep.subr.msk.bf16.mxu1 %vm3517_vm6, %v3516_v58 }
 0x12b   : > { %3521 = vmatpush1.bf16.msk.msra.mxu1 %vm3517_vm6, %v3519_v56  ;;  %3588 = vmatpush1.bf16.msra.mxu0 %v3587_v35 }
 0x12c   : > { %3523 = vmatprep.subr.bf16.mxu1 %v3512_v42  ;;  %3589 = vmatprep.subr.bf16.mxu0 %v4040_v57  ;;  %v1198_v42 = vld [vmem:[%s5444_s5 + $0xa0] sm:$0xff] }
 0x12e   : > { %3033 = vmatmul.mubr.msk.f32.vlgmr.msra.gmra.mrb[4].mxu1 %vm998_vm7, %v996_v59 }
 0x12f   : > { %3525 = vmatpush1.bf16.msra.mxu1 %v3514_v39  ;;  %1082 = vmatprep.mubr.f32.mxu1 %v4038_v7  ;;  %v3560_v39 = vpack.c.bf16 %v1197_v37, %v1196_v36  ;;  %v1379_v37 = vld [vmem:[%s5446_s7] sm:$0xff] }
 0x130   : > { %3528 = vmatprep.subr.msk.bf16.mxu1 %vm3517_vm6, %v3516_v58  ;;  %3591 = vmatpush1.bf16.msra.mxu0 %v3590_v41  ;;  %v3614_v44 = vpack.c.bf16 %v1381_v38, %v1379_v37  ;;  %v3084_v37 = vld [vmem:[%s5446_s7 + $0x1b8] sm:$0xff] }
 0x131   : > { %1342 = vmatprep.subr.mxu0 %v4038_v7 }
 0x132   : > { %3034 = vmatmul.mubr.msk.f32.gmra.mrb[6].mxu1 %vm998_vm7, %v997_v60  ;;  %v3594_v60 = vpack.c.bf16 %v3045_v52, %v3043_v51 }
 0x133   : > { %3531 = vmatpush1.bf16.msk.msra.mxu1 %vm3517_vm6, %v3519_v56  ;;  %1161 = vmatprep.mubr.f32.mxu1 %v4038_v7 }
 0x134   : > { %3532 = vmatprep.subr.bf16.mxu1 %v4040_v57  ;;  %1343 = vmatpush1.msra.mxu0 %v1301_v43 }
 0x136   : > { %3037 = vmatmul.mubr.msk.f32.vlgmr.msra.gmra.mrb[8].mxu1 %vm998_vm7, %v1089_v63  ;;  %v3049_v63 = vld [vmem:[%s5446_s7 + $0xe0] sm:$0xff] }
 0x137   : > { %1167 = vmatprep.mubr.f32.mxu1 %v4038_v7  ;;  %3534 = vmatpush1.bf16.msra.mxu1 %v3533_v0  ;;  %v3598_v6 = vpack.c.bf16 %v3049_v63, %v3047_v62 }
 0x138   : > { %3535 = vmatprep.subr.bf16.mxu1 %v4040_v57 }
 0x13a   : > { %3038 = vmatmul.mubr.msk.f32.gmra.mrb[10].mxu1 %vm998_vm7, %v1090_v3 }
 0x13b   : > { %3537 = vmatpush1.bf16.msra.mxu1 %v3536_v4 }
 0x13c   : > { %3538 = vmatprep.subr.bf16.mxu1 %v4040_v57 }
 0x13f   : > { %3540 = vmatpush1.bf16.msra.mxu1 %v3539_v8  ;;  %v3600_v8 = vpack.c.bf16 %v3054_v2, %v3052_v1 }
 0x140   : > { %3541 = vmatprep.subr.bf16.mxu1 %v4040_v57 }
 0x143   : > { %3543 = vmatpush1.bf16.msra.mxu1 %v3542_v11  ;;  %v3056_v11 = vld [vmem:[%s5446_s7 + $0x118] sm:$0xff] }
 0x144   : > { %3544 = vmatprep.subr.bf16.mxu1 %v4040_v57 }
 0x147   : > { %3546 = vmatpush1.bf16.msra.mxu1 %v3545_v14  ;;  %v3604_v14 = vpack.c.bf16 %v3058_v12, %v3056_v11  ;;  %v1393_v11 = vld [vmem:[%s5446_s7 + $0x70] sm:$0xff]  ;;  %v1396_v12 = vld [vmem:[%s5446_s7 + $0x88] sm:$0xff] }
 0x148   : > { %3547 = vmatprep.subr.bf16.mxu1 %v4040_v57 }
 0x14b   : > { %3549 = vmatpush1.bf16.msra.mxu1 %v3548_v17  ;;  %v3606_v17 = vpack.c.bf16 %v3057_v16, %v3055_v15  ;;  %v1395_v16 = vld [vmem:[%s5446_s7 + $0x80] sm:$0xff] }
 0x14c   : > { %3550 = vmatprep.subr.bf16.mxu1 %v4040_v57 }
 0x14f   : > { %3552 = vmatpush1.bf16.msra.mxu1 %v3551_v22  ;;  %v3608_v22 = vpack.c.bf16 %v3062_v19, %v3060_v18  ;;  %v1400_v19 = vld [vmem:[%s5446_s7 + $0xa8] sm:$0xf] }
 0x150   : > { %3553 = vmatprep.subr.bf16.mxu1 %v4040_v57 }
 0x153   : > { %3555 = vmatpush1.bf16.msra.mxu1 %v3554_v27  ;;  %v3064_v27 = vld [vmem:[%s5446_s7 + $0x158] sm:$0xf] }
 0x154   : > { %3556 = vmatprep.subr.bf16.mxu1 %v4040_v57 }
 0x157   : > { %3558 = vmatpush1.bf16.msra.mxu1 %v3557_v33 }
 0x158   : > { %3559 = vmatprep.subr.bf16.mxu1 %v4040_v57 }
 0x15b   : > { %3561 = vmatpush1.bf16.msra.mxu1 %v3560_v39 }
 0x15c   : > { %1246 = vmatprep.subr.mxu1 %v4038_v7 }
 0x15f   : > { %1247 = vmatpush1.msra.mxu1 %v1198_v42 }
 0x160   : > { %3593 = vmatprep.subr.bf16.mxu1 %v3592_v46  ;;  %v1386_v46 = vld [vmem:[%s5446_s7 + $0x38] sm:$0xff] }
 0x161   : > { %v3616_v55 = vpack.c.bf16 %v1386_v46, %v1384_v45  ;;  %v3085_v46 = vld [vmem:[%s5446_s7 + $0x1c0] sm:$0xff] }
 0x201   : > { %v1078_v47 = vpop.f32.mrb[4].mxu1 }
 0x202   : > { %v1080_v48 = vpop.f32.mrb[5].mxu1 }
 0x205   : > { %v1084_v49 = vpop.f32.mrb[6].mxu1 }
 0x206   : > { %v1086_v50 = vpop.f32.mrb[7].mxu1 }
 0x209   : > { %v1163_v53 = vpop.f32.mrb[8].mxu1 }
 0x20a   : > { %v1174_v56 = vmax.f32 %v1078_v47, %v1163_v53  ;;  %v1165_v58 = vpop.f32.mrb[9].mxu1 }
 0x20b   : > { %v1175_v59 = vmax.f32 %v1080_v48, %v1165_v58  ;;  %v1385_v58 = vld [vmem:[%s5446_s7 + $0x30] sm:$0xff] }
 0x20d   : > { %v1169_v0 = vpop.f32.mrb[10].mxu1  ;;  %3039 = vmatprep.mubr.msk.f32.mxu1 %vm1199_vm8, %v1175_v59  ;;  %3041 = vmatprep.mubr.msk.f32.mxu0 %vm1199_vm8, %v1175_v59 }
 0x20e   : > { %v1176_v3 = vmax.f32 %v1084_v49, %v1169_v0  ;;  %v1171_v4 = vpop.f32.mrb[11].mxu1  ;;  %1271 = vmatmul.mubr.f32.vlgmr.msra.gmra.mrb[12].mxu1 %v1174_v56  ;;  %1367 = vmatmul.mubr.f32.vlgmr.msra.gmra.mrb[8].mxu0 %v1174_v56  ;;  %v1383_v56 = vld [vmem:[%s5446_s7 + $0x20] sm:$0xff] }
 0x20f   : > { %v1177_v5 = vmax.f32 %v1086_v50, %v1171_v4  ;;  %3595 = vmatpush1.bf16.msra.mxu1 %v3594_v60  ;;  %v1388_v60 = vld [vmem:[%s5446_s7 + $0x48] sm:$0xff]  ;;  %v3618_v1 = vpack.c.bf16 %v1385_v58, %v1383_v56  ;;  %v1389_v4 = vld [vmem:[%s5446_s7 + $0x50] sm:$0xff] }
 0x210   : > { %3597 = vmatprep.subr.bf16.mxu1 %v3596_v61  ;;  %v1390_v61 = vld [vmem:[%s5446_s7 + $0x58] sm:$0xff]  ;;  %v3091_v56 = vld [vmem:[%s5446_s7 + $0x1f0] sm:$0xff] }
 0x211   : > { %3040 = vmatprep.mubr.msk.f32.mxu1 %vm1199_vm8, %v1177_v5  ;;  %3042 = vmatprep.mubr.msk.f32.mxu0 %vm1199_vm8, %v1177_v5  ;;  %v3620_v2 = vpack.c.bf16 %v1390_v61, %v1388_v60  ;;  %v1392_v5 = vld [vmem:[%s5446_s7 + $0x68] sm:$0xff]  ;;  %v3100_v60 = vld [vmem:[%s5446_s7 + $0x218] sm:$0xff] }
 0x212   : > { %1276 = vmatmul.mubr.f32.gmra.mrb[14].mxu1 %v1176_v3  ;;  %1372 = vmatmul.mubr.f32.gmra.mrb[10].mxu0 %v1176_v3  ;;  %v1387_v3 = vld [vmem:[%s5446_s7 + $0x40] sm:$0xff]  ;;  %v3102_v61 = vld [vmem:[%s5446_s7 + $0x228] sm:$0xff] }
 0x213   : > { %3599 = vmatpush1.bf16.msra.mxu1 %v3598_v6  ;;  %1504 = vmatprep.mubr.f32.mxu1 %v4038_v7  ;;  %v1394_v6 = vld [vmem:[%s5446_s7 + $0x78] sm:$0xff] }
 0x214   : > { %3601 = vmatprep.subr.bf16.mxu1 %v3600_v8  ;;  %2052 = vmatprep.mubr.f32.mxu0 %v4038_v7  ;;  %v3622_v8 = vpack.c.bf16 %v1389_v4, %v1387_v3  ;;  %v3624_v9 = vpack.c.bf16 %v1394_v6, %v1392_v5  ;;  %v3104_v3 = vld [vmem:[%s5446_s7 + $0x238] sm:$0xff]  ;;  %v3106_v4 = vld [vmem:[%s5446_s7 + $0x248] sm:$0xff]  ;;  %v3093_v5 = vld [vmem:[%s5446_s7 + $0x200] sm:$0xf]  ;;  %v3652_v6 = vpack.c.bf16 %v3102_v61, %v3100_v60 }
 0x215   : > { %v3139_v60 = vld [vmem:[%s5446_s7 + $0x330] sm:$0xff]  ;;  %v3142_v61 = vld [vmem:[%s5446_s7 + $0x348] sm:$0xff] }
 0x217   : > { %3603 = vmatpush1.bf16.msra.mxu1 %v3602_v13  ;;  %v1398_v13 = vld [vmem:[%s5446_s7 + $0x98] sm:$0xff] }
 0x218   : > { %3605 = vmatprep.subr.bf16.mxu1 %v3604_v14  ;;  %v3626_v14 = vpack.c.bf16 %v1393_v11, %v1391_v10  ;;  %v3628_v15 = vpack.c.bf16 %v1398_v13, %v1396_v12  ;;  %v3103_v10 = vld [vmem:[%s5446_s7 + $0x230] sm:$0xff]  ;;  %v3105_v11 = vld [vmem:[%s5446_s7 + $0x240] sm:$0xff]  ;;  %v3108_v12 = vld [vmem:[%s5446_s7 + $0x258] sm:$0xff] }
 0x219   : > { %v3110_v13 = vld [vmem:[%s5446_s7 + $0x268] sm:$0xff] }
 0x21b   : > { %3607 = vmatpush1.bf16.msra.mxu1 %v3606_v17  ;;  %v1397_v17 = vld [vmem:[%s5446_s7 + $0x90] sm:$0xff] }
 0x21c   : > { %3609 = vmatprep.subr.bf16.mxu1 %v3608_v22  ;;  %v3630_v18 = vpack.c.bf16 %v1397_v17, %v1395_v16  ;;  %v3074_v22 = vld [vmem:[%s5446_s7 + $0x168] sm:$0xff]  ;;  %v3107_v16 = vld [vmem:[%s5446_s7 + $0x250] sm:$0xff]  ;;  %v3109_v17 = vld [vmem:[%s5446_s7 + $0x260] sm:$0xff] }
 0x21d   : > { %v3632_v30 = vpack.c.bf16 %v3076_v24, %v3074_v22  ;;  %v3111_v24 = vld [vmem:[%s5446_s7 + $0x270] sm:$0xff] }
 0x21f   : > { %3611 = vmatpush1.bf16.msra.mxu1 %v3610_v26  ;;  %v3075_v26 = vld [vmem:[%s5446_s7 + $0x170] sm:$0xff] }
 0x220   : > { %3065 = vmatprep.subr.msk.mxu1 %vm1005_vm5, %v3064_v27  ;;  %v3078_v27 = vld [vmem:[%s5446_s7 + $0x188] sm:$0xff] }
 0x223   : > { %3066 = vmatpush1.msk.msra.mxu1 %vm1005_vm5, %v3063_v28  ;;  %v3080_v28 = vld [vmem:[%s5446_s7 + $0x198] sm:$0xff] }
 0x224   : > { %3613 = vmatprep.subr.bf16.mxu1 %v3612_v31  ;;  %v3634_v31 = vpack.c.bf16 %v3075_v26, %v3073_v25  ;;  %v3113_v25 = vld [vmem:[%s5446_s7 + $0x280] sm:$0xff]  ;;  %v3116_v26 = vld [vmem:[%s5446_s7 + $0x298] sm:$0xff] }
 0x2e1   : > { %v1272_v32 = vpop.f32.mrb[12].mxu1  ;;  %v1368_v33 = vpop.f32.mrb[8].mxu0 }
 0x2e2   : > { %v4591_v34 = vmax.f32 %v1272_v32, %v1368_v33  ;;  %v1274_v35 = vpop.f32.mrb[13].mxu1  ;;  %v1370_v36 = vpop.f32.mrb[9].mxu0  ;;  %v3636_v32 = vpack.c.bf16 %v3080_v28, %v3078_v27  ;;  %v3077_v33 = vld [vmem:[%s5446_s7 + $0x180] sm:$0xff]  ;;  %v3666_v27 = vpack.c.bf16 %v3113_v25, %v3111_v24  ;;  %v2137_v24 = vld [vmem:[%s5450_s11 + $0x8] sm:$0xff] }
 0x2e3   : > { %v3079_v35 = vld [vmem:[%s5446_s7 + $0x190] sm:$0xff]  ;;  %v3082_v36 = vld [vmem:[%s5446_s7 + $0x1a8] sm:$0xff]  ;;  %v2059_v25 = vld [vmem:[%s5449_s10] sm:$0x1f] }
 0x2e4   : > { %v1426_v47 = vrot.slane %v4591_v34, 1  ;;  %v1627_v48 = vrot.slane %v4591_v34, 2  ;;  %v1745_v49 = vrot.slane %v4591_v34, 3  ;;  %v1862_v50 = vrot.slane %v4591_v34, 4 }
 0x2e5   : > { %v1277_v39 = vpop.f32.mrb[14].mxu1  ;;  %v1373_v40 = vpop.f32.mrb[10].mxu0  ;;  %v3638_v38 = vpack.c.bf16 %v3079_v35, %v3077_v33  ;;  %v3126_v33 = vld [vmem:[%s5446_s7 + $0x2c8] sm:$0xff]  ;;  %v3128_v35 = vld [vmem:[%s5446_s7 + $0x2d8] sm:$0xff] }
 0x2e6   : > { %v4599_v41 = vmax.f32 %v1277_v39, %v1373_v40  ;;  %v1279_v42 = vpop.f32.mrb[15].mxu1  ;;  %v1375_v43 = vpop.f32.mrb[11].mxu0  ;;  %v3640_v39 = vpack.c.bf16 %v3084_v37, %v3082_v36  ;;  %v3081_v40 = vld [vmem:[%s5446_s7 + $0x1a0] sm:$0xff]  ;;  %v3127_v37 = vld [vmem:[%s5446_s7 + $0x2d0] sm:$0xff] }
 0x2e7   : > { %v3083_v42 = vld [vmem:[%s5446_s7 + $0x1b0] sm:$0xff]  ;;  %v3086_v43 = vld [vmem:[%s5446_s7 + $0x1c8] sm:$0xff]  ;;  %v3125_v36 = vld [vmem:[%s5446_s7 + $0x2c0] sm:$0xff] }
 0x2e8   : > { %v1427_v51 = vrot.slane %v4599_v41, 1  ;;  %v1628_v52 = vrot.slane %v4599_v41, 2  ;;  %v1746_v53 = vrot.slane %v4599_v41, 3  ;;  %v1863_v54 = vrot.slane %v4599_v41, 4 }
 0x2ea   : > { %v1428_v59 = vsel %vm625_vm3, %v1426_v47, %v1427_v51  ;;  %v4631_v62 = vsel %vm642_vm0, %v1627_v48, %v1628_v52  ;;  %v4636_v63 = vsel %vm1744_vm10, %v1745_v49, %v1746_v53  ;;  %v4641_v0 = vsel %vm1005_vm5, %v1862_v50, %v1863_v54  ;;  %v3087_v47 = vld [vmem:[%s5446_s7 + $0x1d0] sm:$0xff]  ;;  %v3090_v48 = vld [vmem:[%s5446_s7 + $0x1e8] sm:$0xff]  ;;  %v3092_v49 = vld [vmem:[%s5446_s7 + $0x1f8] sm:$0xff] }
 0x2eb   : > { %3067 = vmatmul.mubr.msk.f32.vlgmr.msra.gmra.mrb[16].mxu1 %vm1429_vm9, %v1428_v59  ;;  %v3646_v50 = vpack.c.bf16 %v3087_v47, %v3085_v46  ;;  %v3094_v59 = vld [vmem:[%s5446_s7 + $0x208] sm:$0xf]  ;;  %v3136_v47 = vld [vmem:[%s5446_s7 + $0x318] sm:$0xff]  ;;  %vm2332_vm0 = vcmask 654336  }
 0x2ec   : > { %3615 = vmatpush1.bf16.msra.mxu1 %v3614_v44  ;;  %1510 = vmatprep.mubr.f32.mxu1 %v4038_v7  ;;  %v3642_v44 = vpack.c.bf16 %v3083_v42, %v3081_v40  ;;  %v3119_v40 = vld [vmem:[%s5446_s7 + $0x2b0] sm:$0xf]  ;;  %v3672_v42 = vpack.c.bf16 %v3128_v35, %v3126_v33  ;;  %v3134_v46 = vld [vmem:[%s5446_s7 + $0x308] sm:$0xff]  ;;  %v2143_v33 = vld [vmem:[%s5450_s11 + $0x38] sm:$0xff] }
 0x2ed   : > { %3617 = vmatprep.subr.bf16.mxu1 %v3616_v55  ;;  %v3089_v55 = vld [vmem:[%s5446_s7 + $0x1e0] sm:$0xff] }
 0x2ee   : > { %v3650_v58 = vpack.c.bf16 %v3091_v56, %v3089_v55  ;;  %v3138_v55 = vld [vmem:[%s5446_s7 + $0x328] sm:$0xff] }
 0x2ef   : > { %3068 = vmatmul.mubr.msk.f32.gmra.mrb[18].mxu1 %vm1429_vm9, %v1427_v51  ;;  %v3648_v51 = vpack.c.bf16 %v3092_v49, %v3090_v48  ;;  %v3680_v49 = vpack.c.bf16 %v3136_v47, %v3134_v46  ;;  %v2151_v46 = vld [vmem:[%s5450_s11 + $0x78] sm:$0xff] }
 0x2f0   : > { %3619 = vmatpush1.bf16.msra.mxu1 %v3618_v1  ;;  %1591 = vmatprep.mubr.f32.mxu1 %v4038_v7  ;;  %v3099_v1 = vld [vmem:[%s5446_s7 + $0x210] sm:$0xff] }
 0x2f1   : > { %3621 = vmatprep.subr.bf16.mxu1 %v3620_v2  ;;  %v3101_v2 = vld [vmem:[%s5446_s7 + $0x220] sm:$0xff] }
 0x2f4   : > { %3623 = vmatpush1.bf16.msra.mxu1 %v3622_v8  ;;  %v3654_v8 = vpack.c.bf16 %v3101_v2, %v3099_v1 }
 0x2f5   : > { %3625 = vmatprep.subr.bf16.mxu1 %v3624_v9  ;;  %v3656_v9 = vpack.c.bf16 %v3106_v4, %v3104_v3  ;;  %v3141_v3 = vld [vmem:[%s5446_s7 + $0x340] sm:$0xff]  ;;  %v3143_v4 = vld [vmem:[%s5446_s7 + $0x350] sm:$0xff] }
 0x2f8   : > { %3627 = vmatpush1.bf16.msra.mxu1 %v3626_v14  ;;  %v3658_v14 = vpack.c.bf16 %v3105_v11, %v3103_v10 }
 0x2f9   : > { %3629 = vmatprep.subr.bf16.mxu1 %v3628_v15  ;;  %v3660_v15 = vpack.c.bf16 %v3110_v13, %v3108_v12 }
 0x2fc   : > { %3631 = vmatpush1.bf16.msra.mxu1 %v3630_v18  ;;  %v3112_v18 = vld [vmem:[%s5446_s7 + $0x278] sm:$0xff] }
 0x2fd   : > { %3069 = vmatprep.subr.msk.mxu1 %vm1005_vm5, %v1400_v19  ;;  %v3662_v19 = vpack.c.bf16 %v3109_v17, %v3107_v16 }
 0x300   : > { %3070 = vmatpush1.msk.msra.mxu1 %vm1005_vm5, %v1399_v29  ;;  %v3115_v29 = vld [vmem:[%s5446_s7 + $0x290] sm:$0xff] }
 0x301   : > { %3071 = vmatmul.mubr.msk.f32.vlgmr.msra.gmra.mrb[16].mxu1 %vm1429_vm9, %v4591_v34  ;;  %3633 = vmatprep.subr.bf16.mxu1 %v3632_v30  ;;  %v3088_v34 = vld [vmem:[%s5446_s7 + $0x1d8] sm:$0xff]  ;;  %v3117_v30 = vld [vmem:[%s5446_s7 + $0x2a0] sm:$0xff] }
 0x302   : > { %3635 = vmatpush1.bf16.msra.mxu1 %v3634_v31  ;;  %1597 = vmatprep.mubr.f32.mxu1 %v4038_v7  ;;  %v3644_v45 = vpack.c.bf16 %v3088_v34, %v3086_v43  ;;  %v3670_v31 = vpack.c.bf16 %v3117_v30, %v3115_v29  ;;  %v3674_v43 = vpack.c.bf16 %v3127_v37, %v3125_v36  ;;  %v2140_v29 = vld [vmem:[%s5450_s11 + $0x20] sm:$0xff]  ;;  %v2141_v30 = vld [vmem:[%s5450_s11 + $0x28] sm:$0xff] }
 0x303   : > { %3637 = vmatprep.subr.bf16.mxu1 %v3636_v32  ;;  %v3120_v32 = vld [vmem:[%s5446_s7 + $0x2b8] sm:$0xf]  ;;  %v2144_v36 = vld [vmem:[%s5450_s11 + $0x40] sm:$0xff]  ;;  %v2145_v37 = vld [vmem:[%s5450_s11 + $0x48] sm:$0xff] }
 0x305   : > { %3072 = vmatmul.mubr.msk.f32.gmra.mrb[18].mxu1 %vm1429_vm9, %v4599_v41 }
 0x306   : > { %3639 = vmatpush1.bf16.msra.mxu1 %v3638_v38  ;;  %1704 = vmatprep.mubr.f32.mxu1 %v4038_v7  ;;  %v3130_v38 = vld [vmem:[%s5446_s7 + $0x2e8] sm:$0xff] }
 0x307   : > { %3641 = vmatprep.subr.bf16.mxu1 %v3640_v39  ;;  %v3132_v39 = vld [vmem:[%s5446_s7 + $0x2f8] sm:$0xff] }
 0x308   : > { %v3676_v34 = vpack.c.bf16 %v3132_v39, %v3130_v38  ;;  %v3717_v38 = vpack.c.bf16 %v2145_v37, %v2144_v36  ;;  %v2146_v39 = vld [vmem:[%s5450_s11 + $0x50] sm:$0xff]  ;;  %v3162_v36 = vld [vmem:[%s5452_s13 + $0x60] sm:$0xff]  ;;  %v3163_v37 = vld [vmem:[%s5452_s13 + $0x68] sm:$0xff] }
 0x30a   : > { %3643 = vmatpush1.bf16.msra.mxu1 %v3642_v44  ;;  %v3129_v44 = vld [vmem:[%s5446_s7 + $0x2e0] sm:$0xff] }
 0x30b   : > { %3645 = vmatprep.subr.bf16.mxu1 %v3644_v45  ;;  %v3131_v45 = vld [vmem:[%s5446_s7 + $0x2f0] sm:$0xff] }
 0x30c   : > { %v3678_v48 = vpack.c.bf16 %v3131_v45, %v3129_v44  ;;  %v2150_v45 = vld [vmem:[%s5450_s11 + $0x70] sm:$0xff] }
 0x30d   : > { %v3726_v47 = vpack.c.bf16 %v2151_v46, %v2150_v45  ;;  %v2328_v46 = vld [vmem:[%s5452_s13 + $0x30] sm:$0xff] }
 0x30e   : > { %3647 = vmatpush1.bf16.msra.mxu1 %v3646_v50  ;;  %v3133_v50 = vld [vmem:[%s5446_s7 + $0x300] sm:$0xff] }
 0x30f   : > { %3649 = vmatprep.subr.bf16.mxu1 %v3648_v51  ;;  %v3135_v51 = vld [vmem:[%s5446_s7 + $0x310] sm:$0xff] }
 0x310   : > { %v3682_v56 = vpack.c.bf16 %v3135_v51, %v3133_v50  ;;  %v2154_v51 = vld [vmem:[%s5450_s11 + $0x90] sm:$0xff] }
 0x312   : > { %3651 = vmatpush1.bf16.msra.mxu1 %v3650_v58 }
 0x313   : > { %3095 = vmatprep.subr.msk.mxu1 %vm1005_vm5, %v3094_v59  ;;  %v3137_v59 = vld [vmem:[%s5446_s7 + $0x320] sm:$0xff] }
 0x314   : > { %v3686_v1 = vpack.c.bf16 %v3139_v60, %v3137_v59  ;;  %v2230_v59 = vld [vmem:[%s5451_s12] sm:$0xff]  ;;  %v2231_v60 = vld [vmem:[%s5451_s12 + $0x8] sm:$0xff] }
 0x316   : > { %3096 = vmatpush1.msk.msra.mxu1 %vm1005_vm5, %v3093_v5  ;;  %v3690_v5 = vpack.c.bf16 %v3143_v4, %v3141_v3  ;;  %v3735_v3 = vpack.c.bf16 %v2231_v60, %v2230_v59  ;;  %v2232_v4 = vld [vmem:[%s5451_s12 + $0x10] sm:$0xff]  ;;  %v3169_v59 = vld [vmem:[%s5452_s13 + $0x98] sm:$0xff] }
 0x317   : > { %3097 = vmatmul.mubr.msk.f32.vlgmr.msra.gmra.mrb[16].mxu1 %vm1429_vm9, %v4631_v62  ;;  %3653 = vmatprep.subr.bf16.mxu1 %v3652_v6  ;;  %v3114_v62 = vld [vmem:[%s5446_s7 + $0x288] sm:$0xff] }
 0x318   : > { %3655 = vmatpush1.bf16.msra.mxu1 %v3654_v8  ;;  %1710 = vmatprep.mubr.f32.mxu1 %v4038_v7  ;;  %v3664_v22 = vpack.c.bf16 %v3114_v62, %v3112_v18  ;;  %v3146_v6 = vld [vmem:[%s5446_s7 + $0x368] sm:$0xf]  ;;  %v3145_v8 = vld [vmem:[%s5446_s7 + $0x360] sm:$0xf] }
 0x319   : > { %3657 = vmatprep.subr.bf16.mxu1 %v3656_v9  ;;  %v1956_v9 = vld [vmem:[%s5447_s8] sm:$0x3] }
 0x31a   : > { %v1961_v10 = vrot.slane %v1956_v9, %v972_v21  ;;  %v1965_v12 = vrot.slane %v1956_v9, %v976_v23  ;;  %v2136_v23 = vld [vmem:[%s5450_s11] sm:$0xff]  ;;  %v2235_v9 = vld [vmem:[%s5451_s12 + $0x28] sm:$0xff] }
 0x31b   : > { %3098 = vmatmul.mubr.msk.f32.gmra.mrb[18].mxu1 %vm1429_vm9, %v1628_v52  ;;  %v3118_v52 = vld [vmem:[%s5446_s7 + $0x2a8] sm:$0xff] }
 0x31c   : > { %3659 = vmatpush1.bf16.msra.mxu1 %v3658_v14  ;;  %1822 = vmatprep.mubr.f32.mxu1 %v4038_v7  ;;  %v3668_v28 = vpack.c.bf16 %v3118_v52, %v3116_v26  ;;  %v3705_v26 = vpack.c.bf16 %v2137_v24, %v2136_v23  ;;  %v2138_v52 = vld [vmem:[%s5450_s11 + $0x10] sm:$0xff]  ;;  %v2247_v23 = vld [vmem:[%s5451_s12 + $0x88] sm:$0xff] }
 0x31d   : > { %3661 = vmatprep.subr.bf16.mxu1 %v3660_v15 }
 0x320   : > { %3663 = vmatpush1.bf16.msra.mxu1 %v3662_v19 }
 0x321   : > { %3665 = vmatprep.subr.bf16.mxu1 %v3664_v22 }
 0x324   : > { %3667 = vmatpush1.bf16.msra.mxu1 %v3666_v27  ;;  %v2139_v27 = vld [vmem:[%s5450_s11 + $0x18] sm:$0xff] }
 0x325   : > { %3669 = vmatprep.subr.bf16.mxu1 %v3668_v28  ;;  %v3708_v28 = vpack.c.bf16 %v2139_v27, %v2138_v52  ;;  %v2322_v27 = vld [vmem:[%s5452_s13] sm:$0xff] }
 0x328   : > { %3671 = vmatpush1.bf16.msra.mxu1 %v3670_v31  ;;  %v3711_v31 = vpack.c.bf16 %v2141_v30, %v2140_v29  ;;  %v3160_v29 = vld [vmem:[%s5452_s13 + $0x50] sm:$0xff] }
 0x329   : > { %3121 = vmatprep.subr.msk.mxu1 %vm1005_vm5, %v3120_v32  ;;  %v2142_v32 = vld [vmem:[%s5450_s11 + $0x30] sm:$0xff] }
 0x32a   : > { %v3714_v35 = vpack.c.bf16 %v2143_v33, %v2142_v32  ;;  %v2324_v32 = vld [vmem:[%s5452_s13 + $0x10] sm:$0xff]  ;;  %v2325_v33 = vld [vmem:[%s5452_s13 + $0x18] sm:$0xff] }
 0x32c   : > { %3122 = vmatpush1.msk.msra.mxu1 %vm1005_vm5, %v3119_v40  ;;  %v2147_v40 = vld [vmem:[%s5450_s11 + $0x58] sm:$0xff] }
 0x32d   : > { %3123 = vmatmul.mubr.msk.f32.vlgmr.msra.gmra.mrb[16].mxu1 %vm1429_vm9, %v4636_v63  ;;  %3673 = vmatprep.subr.bf16.mxu1 %v3672_v42  ;;  %v3140_v63 = vld [vmem:[%s5446_s7 + $0x338] sm:$0xff]  ;;  %v3720_v42 = vpack.c.bf16 %v2147_v40, %v2146_v39  ;;  %v3783_v39 = vpack.c.bf16 %v3163_v37, %v3162_v36  ;;  %v2326_v40 = vld [vmem:[%s5452_s13 + $0x20] sm:$0xff]  ;;  %v3195_v37 = vld [vmem:[%s5452_s13 + $0x150] sm:$0xff] }
 0x32e   : > { %3675 = vmatpush1.bf16.msra.mxu1 %v3674_v43  ;;  %1828 = vmatprep.mubr.f32.mxu1 %v4038_v7  ;;  %v3684_v58 = vpack.c.bf16 %v3140_v63, %v3138_v55  ;;  %v2148_v43 = vld [vmem:[%s5450_s11 + $0x60] sm:$0xff]  ;;  %v2155_v55 = vld [vmem:[%s5450_s11 + $0x98] sm:$0xff] }
 0x32f   : > { %3677 = vmatprep.subr.bf16.mxu1 %v3676_v34  ;;  %v2149_v34 = vld [vmem:[%s5450_s11 + $0x68] sm:$0xff]  ;;  %v3732_v63 = vpack.c.bf16 %v2155_v55, %v2154_v51  ;;  %v2330_v55 = vld [vmem:[%s5452_s13 + $0x40] sm:$0xff] }
 0x330   : > { %v3723_v44 = vpack.c.bf16 %v2149_v34, %v2148_v43  ;;  %v3164_v43 = vld [vmem:[%s5452_s13 + $0x70] sm:$0xff]  ;;  %v3165_v34 = vld [vmem:[%s5452_s13 + $0x78] sm:$0xff] }
 0x331   : > { %3124 = vmatmul.mubr.msk.f32.gmra.mrb[18].mxu1 %vm1429_vm9, %v1746_v53  ;;  %v3144_v53 = vld [vmem:[%s5446_s7 + $0x358] sm:$0xff]  ;;  %v3786_v45 = vpack.c.bf16 %v3165_v34, %v3164_v43  ;;  %v3199_v34 = vld [vmem:[%s5452_s13 + $0x170] sm:$0xff] }
 0x332   : > { %3679 = vmatpush1.bf16.msra.mxu1 %v3678_v48  ;;  %1939 = vmatprep.mubr.f32.mxu1 %v4038_v7  ;;  %v3688_v2 = vpack.c.bf16 %v3144_v53, %v3142_v61  ;;  %v2152_v48 = vld [vmem:[%s5450_s11 + $0x80] sm:$0xff] }
 0x333   : > { %3681 = vmatprep.subr.bf16.mxu1 %v3680_v49  ;;  %v2153_v49 = vld [vmem:[%s5450_s11 + $0x88] sm:$0xff] }
 0x334   : > { %v3729_v50 = vpack.c.bf16 %v2153_v49, %v2152_v48  ;;  %v3166_v48 = vld [vmem:[%s5452_s13 + $0x80] sm:$0xff]  ;;  %v3167_v49 = vld [vmem:[%s5452_s13 + $0x88] sm:$0xff] }
 0x335   : > { %v3789_v51 = vpack.c.bf16 %v3167_v49, %v3166_v48 }
 0x336   : > { %3683 = vmatpush1.bf16.msra.mxu1 %v3682_v56 }
 0x337   : > { %3685 = vmatprep.subr.bf16.mxu1 %v3684_v58 }
 0x33a   : > { %3687 = vmatpush1.bf16.msra.mxu1 %v3686_v1 }
 0x33b   : > { %3689 = vmatprep.subr.bf16.mxu1 %v3688_v2 }
 0x33e   : > { %3691 = vmatpush1.bf16.msra.mxu1 %v3690_v5  ;;  %v2233_v5 = vld [vmem:[%s5451_s12 + $0x18] sm:$0xff] }
 0x33f   : > { %3147 = vmatprep.subr.msk.mxu1 %vm1005_vm5, %v3146_v6  ;;  %v3738_v6 = vpack.c.bf16 %v2233_v5, %v2232_v4 }
 0x342   : > { %3148 = vmatpush1.msk.msra.mxu1 %vm1005_vm5, %v3145_v8  ;;  %v2234_v8 = vld [vmem:[%s5451_s12 + $0x20] sm:$0xff] }
 0x343   : > { %3149 = vmatmul.mubr.msk.f32.vlgmr.msra.gmra.mrb[16].mxu1 %vm1429_vm9, %v4641_v0  ;;  %3779 = vmatprep.subr.bf16.mxu1 %v4040_v57 }
 0x344   : > { %1945 = vmatprep.mubr.f32.mxu1 %v4038_v7 }
 0x347   : > { %3150 = vmatmul.mubr.msk.f32.gmra.mrb[18].mxu1 %vm1429_vm9, %v1863_v54 }
 0x348   : > { %3340 = vmatprep.mubr.msk.f32.mxu1 %vm4041_vm15, %v4038_v7 }
 0x416   : > { %v1941_v11 = vpop.f32.mrb[16].mxu1 }
 0x417   : > { %v1943_v0 = vpop.f32.mrb[17].mxu1  ;;  %v1968_v13 = vadd.f32 %v1961_v10, %v1941_v11  ;;  %v2236_v11 = vld [vmem:[%s5451_s12 + $0x30] sm:$0xff] }
 0x418   : > { %v1969_v14 = vadd.f32 %v1965_v12, %v1943_v0 }
 0x419   : > { %v1972_v54 = vmax.f32 %v1968_v13, 0.0  ;;  %v2238_v13 = vld [vmem:[%s5451_s12 + $0x40] sm:$0xff] }
 0x41a   : > { %v1947_v15 = vpop.f32.mrb[18].mxu1  ;;  %v1973_v62 = vmax.f32 %v1969_v14, 0.0  ;;  %v2239_v14 = vld [vmem:[%s5451_s12 + $0x48] sm:$0xff] }
 0x41b   : > { %v1970_v16 = vadd.f32 %v1961_v10, %v1947_v15  ;;  %v1949_v17 = vpop.f32.mrb[19].mxu1  ;;  %v3741_v10 = vpack.c.bf16 %v2235_v9, %v2234_v8  ;;  %v3747_v15 = vpack.c.bf16 %v2239_v14, %v2238_v13  ;;  %v3173_v9 = vld [vmem:[%s5452_s13 + $0xb0] sm:$0xff] }
 0x41c   : > { %v1971_v41 = vadd.f32 %v1965_v12, %v1949_v17  ;;  %v2237_v12 = vld [vmem:[%s5451_s12 + $0x38] sm:$0xff]  ;;  %v3177_v14 = vld [vmem:[%s5452_s13 + $0xd0] sm:$0xff] }
 0x41d   : > { %v1974_v18 = vmax.f32 %v1970_v16, 0.0  ;;  %v3744_v0 = vpack.c.bf16 %v2237_v12, %v2236_v11  ;;  %v2240_v16 = vld [vmem:[%s5451_s12 + $0x50] sm:$0xff]  ;;  %v2241_v17 = vld [vmem:[%s5451_s12 + $0x58] sm:$0xff]  ;;  %v3175_v12 = vld [vmem:[%s5452_s13 + $0xc0] sm:$0xff] }
 0x41e   : > { %v1975_v19 = vmax.f32 %v1971_v41, 0.0  ;;  %v3750_v41 = vpack.c.bf16 %v2241_v17, %v2240_v16  ;;  %v3179_v17 = vld [vmem:[%s5452_s13 + $0xe0] sm:$0xff] }
 0x41f   : > { %v3695_v22 = vpack.c.bf16 %v1974_v18, %v1972_v54  ;;  %v2242_v54 = vld [vmem:[%s5451_s12 + $0x60] sm:$0xff]  ;;  %v2243_v18 = vld [vmem:[%s5451_s12 + $0x68] sm:$0xff] }
 0x420   : > { %v3692_v21 = vpack.c.bf16 %v1975_v19, %v1973_v62  ;;  %v3753_v62 = vpack.c.bf16 %v2243_v18, %v2242_v54  ;;  %v2244_v19 = vld [vmem:[%s5451_s12 + $0x70] sm:$0xff] }
 0x421   : > { %v3182_v18 = vld [vmem:[%s5452_s13 + $0xf0] sm:$0xff] }
 0x422   : > { %3694 = vmatprep.subr.msk.bf16.mxu0 %vm3693_vm12, %v3692_v21 }
 0x423   : > { %3697 = vmatpush1.bf16.msk.msra.mxu0 %vm3693_vm12, %v3695_v22 }
 0x424   : > { %3700 = vmatprep.subr.msk.bf16.mxu0 %vm3693_vm12, %v3692_v21 }
 0x426   : > { %3153 = vmatmul.mubr.msk.f32.vlgmr.msra.gmra.mrb[12].mxu0 %vm1977_vm13, %v1976_v20  ;;  %v2246_v20 = vld [vmem:[%s5451_s12 + $0x80] sm:$0xff] }
 0x427   : > { %3703 = vmatpush1.bf16.msk.msra.mxu0 %vm3693_vm12, %v3695_v22  ;;  %2127 = vmatprep.mubr.f32.mxu0 %v4038_v7  ;;  %v2245_v22 = vld [vmem:[%s5451_s12 + $0x78] sm:$0xff]  ;;  %v3759_v24 = vpack.c.bf16 %v2247_v23, %v2246_v20  ;;  %v3185_v20 = vld [vmem:[%s5452_s13 + $0x108] sm:$0xff] }
 0x428   : > { %3704 = vmatprep.subr.bf16.mxu0 %v4040_v57  ;;  %v3756_v21 = vpack.c.bf16 %v2245_v22, %v2244_v19 }
 0x42a   : > { %3156 = vmatmul.mubr.msk.f32.vlgmr.msra.gmra.mrb[14].mxu0 %vm1977_vm13, %v2059_v25  ;;  %v2248_v25 = vld [vmem:[%s5451_s12 + $0x90] sm:$0xff] }
 0x42b   : > { %3706 = vmatpush1.bf16.msra.mxu0 %v3705_v26  ;;  %v2249_v26 = vld [vmem:[%s5451_s12 + $0x98] sm:$0xff] }
 0x42c   : > { %3707 = vmatprep.subr.bf16.mxu0 %v4040_v57  ;;  %v3762_v52 = vpack.c.bf16 %v2249_v26, %v2248_v25  ;;  %v3187_v25 = vld [vmem:[%s5452_s13 + $0x118] sm:$0xff] }
 0x42f   : > { %3709 = vmatpush1.bf16.msra.mxu0 %v3708_v28  ;;  %v2323_v28 = vld [vmem:[%s5452_s13 + $0x8] sm:$0xff] }
 0x430   : > { %3710 = vmatprep.subr.bf16.mxu0 %v4040_v57  ;;  %v3765_v30 = vpack.c.bf16 %v2323_v28, %v2322_v27  ;;  %v3189_v27 = vld [vmem:[%s5452_s13 + $0x128] sm:$0xff] }
 0x433   : > { %3712 = vmatpush1.bf16.msra.mxu0 %v3711_v31  ;;  %v3161_v31 = vld [vmem:[%s5452_s13 + $0x58] sm:$0xff] }
 0x434   : > { %3713 = vmatprep.subr.bf16.mxu0 %v4040_v57 }
 0x437   : > { %3715 = vmatpush1.bf16.msra.mxu0 %v3714_v35  ;;  %v3780_v35 = vpack.c.bf16 %v3161_v31, %v3160_v29  ;;  %v3190_v29 = vld [vmem:[%s5452_s13 + $0x130] sm:$0xff] }
 0x438   : > { %3716 = vmatprep.subr.bf16.mxu0 %v4040_v57 }
 0x439   : > { %3781 = vmatpush3.bf16.msra.mxu1 %v3780_v35 }
 0x43a   : > { %3782 = vmatprep.subr.bf16.mxu1 %v4040_v57 }
 0x43b   : > { %3718 = vmatpush1.bf16.msra.mxu0 %v3717_v38  ;;  %v3768_v38 = vpack.c.bf16 %v2325_v33, %v2324_v32  ;;  %v3193_v32 = vld [vmem:[%s5452_s13 + $0x140] sm:$0xff]  ;;  %v3194_v33 = vld [vmem:[%s5452_s13 + $0x148] sm:$0xff] }
 0x43c   : > { %3719 = vmatprep.subr.bf16.mxu0 %v4040_v57  ;;  %v3825_v35 = vpack.c.bf16 %v3194_v33, %v3193_v32  ;;  %v2844_v32 = vld [vmem:[%s5456_s17 + $0x50] sm:$0xff]  ;;  %v2845_v33 = vld [vmem:[%s5456_s17 + $0x58] sm:$0xff] }
 0x43d   : > { %3784 = vmatpush3.bf16.msra.mxu1 %v3783_v39 }
 0x43e   : > { %3785 = vmatprep.subr.bf16.mxu1 %v4040_v57 }
 0x43f   : > { %3721 = vmatpush1.bf16.msra.mxu0 %v3720_v42  ;;  %v2327_v42 = vld [vmem:[%s5452_s13 + $0x28] sm:$0xff] }
 0x440   : > { %3722 = vmatprep.subr.bf16.mxu0 %v4040_v57 }
 0x441   : > { %3787 = vmatpush3.bf16.msra.mxu1 %v3786_v45 }
 0x442   : > { %3788 = vmatprep.subr.bf16.mxu1 %v4040_v57 }
 0x443   : > { %3724 = vmatpush1.bf16.msra.mxu0 %v3723_v44  ;;  %v3771_v44 = vpack.c.bf16 %v2327_v42, %v2326_v40  ;;  %v3197_v40 = vld [vmem:[%s5452_s13 + $0x160] sm:$0xff]  ;;  %v3198_v42 = vld [vmem:[%s5452_s13 + $0x168] sm:$0xff] }
 0x444   : > { %3725 = vmatprep.subr.bf16.mxu0 %v4040_v57  ;;  %v3831_v43 = vpack.c.bf16 %v3198_v42, %v3197_v40  ;;  %v2849_v40 = vld [vmem:[%s5456_s17 + $0x78] sm:$0xff] }
 0x445   : > { %3790 = vmatpush3.bf16.msra.mxu1 %v3789_v51  ;;  %v2748_v51 = vld [vmem:[%s5454_s15 + $0x8] sm:$0xff] }
 0x446   : > { %3791 = vmatprep.subr.bf16.mxu1 %v4040_v57 }
 0x447   : > { %3727 = vmatpush1.bf16.msra.mxu0 %v3726_v47  ;;  %v2329_v47 = vld [vmem:[%s5452_s13 + $0x38] sm:$0xff] }
 0x448   : > { %3728 = vmatprep.subr.bf16.mxu0 %v4040_v57 }
 0x44b   : > { %3730 = vmatpush1.bf16.msra.mxu0 %v3729_v50  ;;  %v3774_v50 = vpack.c.bf16 %v2329_v47, %v2328_v46  ;;  %v3201_v46 = vld [vmem:[%s5452_s13 + $0x180] sm:$0xff]  ;;  %v3202_v47 = vld [vmem:[%s5452_s13 + $0x188] sm:$0xff] }
 0x44c   : > { %3731 = vmatprep.subr.bf16.mxu0 %v4040_v57  ;;  %v3837_v48 = vpack.c.bf16 %v3202_v47, %v3201_v46 }
 0x44f   : > { %3733 = vmatpush1.bf16.msra.mxu0 %v3732_v63  ;;  %v2331_v63 = vld [vmem:[%s5452_s13 + $0x48] sm:$0xff] }
 0x450   : > { %3734 = vmatprep.subr.bf16.mxu0 %v4040_v57 }
 0x4f9   : > { %v2054_v56 = vpop.f32.mrb[12].mxu0 }
 0x4fa   : > { %v2056_v58 = vpop.f32.mrb[13].mxu0 }
 0x4fd   : > { %v2129_v61 = vpop.f32.mrb[14].mxu0 }
 0x4fe   : > { %v2134_v53 = vmax.f32 %v2054_v56, %v2129_v61  ;;  %v2131_v1 = vpop.f32.mrb[15].mxu0  ;;  %v3777_v56 = vpack.c.bf16 %v2331_v63, %v2330_v55  ;;  %v2749_v55 = vld [vmem:[%s5454_s15 + $0x10] sm:$0xff] }
 0x4ff   : > { %v2135_v2 = vmax.f32 %v2056_v58, %v2131_v1  ;;  %v3168_v58 = vld [vmem:[%s5452_s13 + $0x90] sm:$0xff]  ;;  %v3171_v1 = vld [vmem:[%s5452_s13 + $0xa0] sm:$0xff] }
 0x500   : > { %v3792_v60 = vpack.c.bf16 %v3169_v59, %v3168_v58  ;;  %v2751_v59 = vld [vmem:[%s5454_s15 + $0x20] sm:$0xff] }
 0x501   : > { %3157 = vmatprep.mubr.msk.f32.mxu0 %vm2156_vm14, %v2135_v2 }
 0x502   : > { %2225 = vmatmul.mubr.f32.vlgmr.msra.gmra.mrb[16].mxu0 %v2134_v53  ;;  %3793 = vmatpush3.bf16.msra.mxu1 %v3792_v60  ;;  %v2752_v60 = vld [vmem:[%s5454_s15 + $0x28] sm:$0xff] }
 0x503   : > { %3736 = vmatpush1.bf16.msra.mxu0 %v3735_v3  ;;  %3158 = vmatprep.mubr.msk.f32.mxu0 %vm2156_vm14, %v2135_v2  ;;  %v3172_v2 = vld [vmem:[%s5452_s13 + $0xa8] sm:$0xff] }
 0x504   : > { %3737 = vmatprep.subr.bf16.mxu0 %v4040_v57  ;;  %3794 = vmatprep.subr.bf16.mxu1 %v4040_v57 }
 0x507   : > { %3739 = vmatpush1.bf16.msra.mxu0 %v3738_v6  ;;  %v3795_v6 = vpack.c.bf16 %v3172_v2, %v3171_v1  ;;  %v2754_v1 = vld [vmem:[%s5454_s15 + $0x38] sm:$0xff] }
 0x508   : > { %3740 = vmatprep.subr.bf16.mxu0 %v4040_v57 }
 0x50b   : > { %3742 = vmatpush1.bf16.msra.mxu0 %v3741_v10  ;;  %v3174_v10 = vld [vmem:[%s5452_s13 + $0xb8] sm:$0xff] }
 0x50c   : > { %3743 = vmatprep.subr.bf16.mxu0 %v4040_v57  ;;  %v3798_v11 = vpack.c.bf16 %v3174_v10, %v3173_v9  ;;  %v2759_v10 = vld [vmem:[%s5454_s15 + $0x60] sm:$0xff] }
 0x50f   : > { %3745 = vmatpush1.bf16.msra.mxu0 %v3744_v0  ;;  %v3176_v0 = vld [vmem:[%s5452_s13 + $0xc8] sm:$0xff] }
 0x510   : > { %3746 = vmatprep.subr.bf16.mxu0 %v4040_v57  ;;  %v3801_v13 = vpack.c.bf16 %v3176_v0, %v3175_v12  ;;  %v2761_v0 = vld [vmem:[%s5454_s15 + $0x70] sm:$0xff] }
 0x513   : > { %3748 = vmatpush1.bf16.msra.mxu0 %v3747_v15  ;;  %v3178_v15 = vld [vmem:[%s5452_s13 + $0xd8] sm:$0xff] }
 0x514   : > { %3749 = vmatprep.subr.bf16.mxu0 %v4040_v57  ;;  %v3804_v16 = vpack.c.bf16 %v3178_v15, %v3177_v14 }
 0x517   : > { %3751 = vmatpush1.bf16.msra.mxu0 %v3750_v41  ;;  %v3180_v41 = vld [vmem:[%s5452_s13 + $0xe8] sm:$0xff] }
 0x518   : > { %3752 = vmatprep.subr.bf16.mxu0 %v4040_v57  ;;  %v3807_v54 = vpack.c.bf16 %v3180_v41, %v3179_v17  ;;  %v2321_v17 = vld [vmem:[%s5453_s14] sm:$0x1] }
 0x519   : > { %v2834_v41 = vld [vmem:[%s5456_s17] sm:$0xff] }
 0x51b   : > { %3754 = vmatpush1.bf16.msra.mxu0 %v3753_v62  ;;  %v3183_v62 = vld [vmem:[%s5452_s13 + $0xf8] sm:$0xff] }
 0x51c   : > { %3755 = vmatprep.subr.bf16.mxu0 %v4040_v57  ;;  %v3810_v19 = vpack.c.bf16 %v3183_v62, %v3182_v18 }
 0x51f   : > { %3757 = vmatpush1.bf16.msra.mxu0 %v3756_v21  ;;  %v3184_v21 = vld [vmem:[%s5452_s13 + $0x100] sm:$0xff] }
 0x520   : > { %3758 = vmatprep.subr.bf16.mxu0 %v4040_v57  ;;  %v3813_v23 = vpack.c.bf16 %v3185_v20, %v3184_v21  ;;  %v2836_v20 = vld [vmem:[%s5456_s17 + $0x10] sm:$0xff] }
 0x523   : > { %3760 = vmatpush1.bf16.msra.mxu0 %v3759_v24  ;;  %v3186_v24 = vld [vmem:[%s5452_s13 + $0x110] sm:$0xff] }
 0x524   : > { %3761 = vmatprep.subr.bf16.mxu0 %v4040_v57  ;;  %v3816_v26 = vpack.c.bf16 %v3187_v25, %v3186_v24  ;;  %v2838_v25 = vld [vmem:[%s5456_s17 + $0x20] sm:$0xff] }
 0x527   : > { %3763 = vmatpush1.bf16.msra.mxu0 %v3762_v52  ;;  %v3188_v52 = vld [vmem:[%s5452_s13 + $0x120] sm:$0xff] }
 0x528   : > { %3764 = vmatprep.subr.bf16.mxu0 %v4040_v57  ;;  %v3819_v28 = vpack.c.bf16 %v3189_v27, %v3188_v52  ;;  %v2840_v27 = vld [vmem:[%s5456_s17 + $0x30] sm:$0xff] }
 0x52a   : > { %2315 = vmatmul.mubr.f32.vlgmr.msra.gmra.mrb[18].mxu0 %v2134_v53 }
 0x52b   : > { %3766 = vmatpush3.bf16.msra.mxu0 %v3765_v30  ;;  %3317 = vmatprep.mubr.msk.f32.mxu0 %vm4041_vm15, %v4038_v7  ;;  %v3191_v30 = vld [vmem:[%s5452_s13 + $0x138] sm:$0xff] }
 0x52c   : > { %3767 = vmatprep.subr.bf16.mxu0 %v4040_v57  ;;  %v3822_v31 = vpack.c.bf16 %v3191_v30, %v3190_v29  ;;  %v2842_v29 = vld [vmem:[%s5456_s17 + $0x40] sm:$0xff]  ;;  %v2843_v30 = vld [vmem:[%s5456_s17 + $0x48] sm:$0xff] }
 0x52f   : > { %3769 = vmatpush3.bf16.msra.mxu0 %v3768_v38  ;;  %v3196_v38 = vld [vmem:[%s5452_s13 + $0x158] sm:$0xff] }
 0x530   : > { %3770 = vmatprep.subr.bf16.mxu0 %v4040_v57  ;;  %v3828_v39 = vpack.c.bf16 %v3196_v38, %v3195_v37  ;;  %v2847_v37 = vld [vmem:[%s5456_s17 + $0x68] sm:$0xff] }
 0x533   : > { %3772 = vmatpush3.bf16.msra.mxu0 %v3771_v44  ;;  %v3200_v44 = vld [vmem:[%s5452_s13 + $0x178] sm:$0xff] }
 0x534   : > { %3773 = vmatprep.subr.bf16.mxu0 %v4040_v57  ;;  %v3834_v45 = vpack.c.bf16 %v3200_v44, %v3199_v34 }
 0x537   : > { %3775 = vmatpush3.bf16.msra.mxu0 %v3774_v50  ;;  %v2747_v50 = vld [vmem:[%s5454_s15] sm:$0xff] }
 0x538   : > { %3776 = vmatprep.subr.bf16.mxu0 %v4040_v57  ;;  %v3840_v63 = vpack.c.bf16 %v2748_v51, %v2747_v50 }
 0x53b   : > { %3778 = vmatpush3.bf16.msra.mxu0 %v3777_v56  ;;  %v2750_v56 = vld [vmem:[%s5454_s15 + $0x18] sm:$0xff] }
 0x53c   : > { %3839 = vmatprep.subr.bf16.mxu0 %v4040_v57  ;;  %v3843_v58 = vpack.c.bf16 %v2750_v56, %v2749_v55 }
 0x5d5   : > { %v2226_v61 = vpop.f32.mrb[16].mxu0 }
 0x5d6   : > { %v2228_v53 = vpop.f32.mrb[17].mxu0 }
 0x5d7   : > { %v2753_v53 = vld [vmem:[%s5454_s15 + $0x30] sm:$0xff] }
 0x5d8   : > { %v3849_v2 = vpack.c.bf16 %v2754_v1, %v2753_v53 }
 0x5fd   : > { %v2316_v3 = vpop.f32.mrb[18].mxu0 }
 0x5fe   : > { %v5152_v4 = vmax.f32 %v2226_v61, %v2316_v3  ;;  %v2318_v5 = vpop.f32.mrb[19].mxu0  ;;  %v3846_v61 = vpack.c.bf16 %v2752_v60, %v2751_v59  ;;  %v2755_v3 = vld [vmem:[%s5454_s15 + $0x40] sm:$0xff] }
 0x600   : > { %v2418_v8 = vrot.slane %v5152_v4, 1  ;;  %3318 = vmatmul.mubr.msk.f32.vlgmr.msra.gmra.mrb[20].mxu0 %vm2332_vm0, %v5152_v4  ;;  %v2503_v22 = vrot.slane %v5152_v4, 2  ;;  %v2588_v36 = vrot.slane %v5152_v4, 3  ;;  %v2673_v49 = vrot.slane %v5152_v4, 4  ;;  %v2756_v4 = vld [vmem:[%s5454_s15 + $0x48] sm:$0xff] }
 0x601   : > { %3444 = vmatprep.mubr.msk.f32.mxu0 %vm4041_vm15, %v4038_v7  ;;  %3841 = vmatpush3.bf16.msra.mxu0 %v3840_v63  ;;  %v3852_v5 = vpack.c.bf16 %v2756_v4, %v2755_v3 }
 0x602   : > { %3341 = vmatmul.mubr.msk.f32.vlgmr.msra.gmra.mrb[20].mxu1 %vm2332_vm0, %v2418_v8  ;;  %3842 = vmatprep.subr.bf16.mxu0 %v4040_v57  ;;  %v2758_v8 = vld [vmem:[%s5454_s15 + $0x58] sm:$0xff] }
 0x603   : > { %3796 = vmatpush3.bf16.msra.mxu1 %v3795_v6  ;;  %3363 = vmatprep.mubr.msk.f32.mxu1 %vm4041_vm15, %v4038_v7  ;;  %v2757_v6 = vld [vmem:[%s5454_s15 + $0x50] sm:$0xff] }
 0x604   : > { %3797 = vmatprep.subr.bf16.mxu1 %v4040_v57  ;;  %v3855_v9 = vpack.c.bf16 %v2758_v8, %v2757_v6 }
 0x605   : > { %3844 = vmatpush3.bf16.msra.mxu0 %v3843_v58 }
 0x606   : > { %3845 = vmatprep.subr.bf16.mxu0 %v4040_v57 }
 0x607   : > { %3799 = vmatpush3.bf16.msra.mxu1 %v3798_v11  ;;  %v2760_v11 = vld [vmem:[%s5454_s15 + $0x68] sm:$0xff] }
 0x608   : > { %3800 = vmatprep.subr.bf16.mxu1 %v4040_v57  ;;  %v3858_v12 = vpack.c.bf16 %v2760_v11, %v2759_v10 }
 0x609   : > { %3847 = vmatpush3.bf16.msra.mxu0 %v3846_v61 }
 0x60a   : > { %3848 = vmatprep.subr.bf16.mxu0 %v4040_v57 }
 0x60b   : > { %3802 = vmatpush3.bf16.msra.mxu1 %v3801_v13  ;;  %v2762_v13 = vld [vmem:[%s5454_s15 + $0x78] sm:$0xff] }
 0x60c   : > { %3803 = vmatprep.subr.bf16.mxu1 %v4040_v57  ;;  %v3861_v14 = vpack.c.bf16 %v2762_v13, %v2761_v0 }
 0x60d   : > { %3850 = vmatpush3.bf16.msra.mxu0 %v3849_v2 }
 0x60e   : > { %3851 = vmatprep.subr.bf16.mxu0 %v4040_v57 }
 0x60f   : > { %3805 = vmatpush3.bf16.msra.mxu1 %v3804_v16 }
 0x610   : > { %3806 = vmatprep.subr.bf16.mxu1 %v4040_v57 }
 0x611   : > { %3853 = vmatpush3.bf16.msra.mxu0 %v3852_v5 }
 0x612   : > { %3854 = vmatprep.subr.bf16.mxu0 %v4040_v57 }
 0x613   : > { %3808 = vmatpush3.bf16.msra.mxu1 %v3807_v54  ;;  %v2835_v54 = vld [vmem:[%s5456_s17 + $0x8] sm:$0xff] }
 0x614   : > { %3809 = vmatprep.subr.bf16.mxu1 %v4040_v57 }
 0x615   : > { %3856 = vmatpush3.bf16.msra.mxu0 %v3855_v9 }
 0x616   : > { %3364 = vmatmul.mubr.msk.f32.vlgmr.msra.gmra.mrb[20].mxu1 %vm2332_vm0, %v2503_v22  ;;  %3857 = vmatprep.subr.bf16.mxu0 %v4040_v57 }
 0x617   : > { %3811 = vmatpush3.bf16.msra.mxu1 %v3810_v19  ;;  %3386 = vmatprep.mubr.msk.f32.mxu1 %vm4041_vm15, %v4038_v7  ;;  %v3864_v19 = vpack.c.bf16 %v2835_v54, %v2834_v41 }
 0x618   : > { %3812 = vmatprep.subr.bf16.mxu1 %v4040_v57 }
 0x619   : > { %3859 = vmatpush3.bf16.msra.mxu0 %v3858_v12 }
 0x61a   : > { %3860 = vmatprep.subr.bf16.mxu0 %v4040_v57 }
 0x61b   : > { %3814 = vmatpush3.bf16.msra.mxu1 %v3813_v23  ;;  %v2837_v23 = vld [vmem:[%s5456_s17 + $0x18] sm:$0xff] }
 0x61c   : > { %3815 = vmatprep.subr.bf16.mxu1 %v4040_v57  ;;  %v3867_v24 = vpack.c.bf16 %v2837_v23, %v2836_v20 }
 0x61d   : > { %3862 = vmatpush3.bf16.msra.mxu0 %v3861_v14 }
 0x61e   : > { %3863 = vmatprep.subr.bf16.mxu0 %v4040_v57 }
 0x61f   : > { %3817 = vmatpush3.bf16.msra.mxu1 %v3816_v26  ;;  %v2839_v26 = vld [vmem:[%s5456_s17 + $0x28] sm:$0xff] }
 0x620   : > { %3818 = vmatprep.subr.bf16.mxu1 %v4040_v57  ;;  %v3870_v52 = vpack.c.bf16 %v2839_v26, %v2838_v25 }
 0x623   : > { %3820 = vmatpush3.bf16.msra.mxu1 %v3819_v28 }
 0x624   : > { %3821 = vmatprep.subr.bf16.mxu1 %v4040_v57 }
 0x627   : > { %3823 = vmatpush3.bf16.msra.mxu1 %v3822_v31  ;;  %v3876_v31 = vpack.c.bf16 %v2843_v30, %v2842_v29 }
 0x628   : > { %3824 = vmatprep.subr.bf16.mxu1 %v4040_v57 }
 0x62a   : > { %3387 = vmatmul.mubr.msk.f32.vlgmr.msra.gmra.mrb[20].mxu1 %vm2332_vm0, %v2588_v36  ;;  %v2846_v36 = vld [vmem:[%s5456_s17 + $0x60] sm:$0xff] }
 0x62b   : > { %3826 = vmatpush3.bf16.msra.mxu1 %v3825_v35  ;;  %3409 = vmatprep.mubr.msk.f32.mxu1 %vm4041_vm15, %v4038_v7  ;;  %v3879_v35 = vpack.c.bf16 %v2845_v33, %v2844_v32  ;;  %v3882_v38 = vpack.c.bf16 %v2847_v37, %v2846_v36 }
 0x62c   : > { %3827 = vmatprep.subr.bf16.mxu1 %v4040_v57 }
 0x62f   : > { %3829 = vmatpush3.bf16.msra.mxu1 %v3828_v39  ;;  %v2848_v39 = vld [vmem:[%s5456_s17 + $0x70] sm:$0xff] }
 0x630   : > { %3830 = vmatprep.subr.bf16.mxu1 %v4040_v57  ;;  %v3885_v42 = vpack.c.bf16 %v2849_v40, %v2848_v39 }
 0x633   : > { %3832 = vmatpush3.bf16.msra.mxu1 %v3831_v43  ;;  %v2763_v43 = vld [vmem:[%s5455_s16] sm:$0x1] }
 0x634   : > { %3833 = vmatprep.subr.bf16.mxu1 %v4040_v57 }
 0x637   : > { %3835 = vmatpush3.bf16.msra.mxu1 %v3834_v45 }
 0x638   : > { %3836 = vmatprep.subr.bf16.mxu1 %v4040_v57 }
 0x63b   : > { %3838 = vmatpush3.bf16.msra.mxu1 %v3837_v48 }
 0x63e   : > { %3410 = vmatmul.mubr.msk.f32.vlgmr.msra.gmra.mrb[20].mxu1 %vm2332_vm0, %v2673_v49 }
 0x6d3   : > { %v2402_v15 = vpop.f32.mrb[20].mxu0 }
 0x6d4   : > { %v3319_v16 = vpop.f32.mrb[21].mxu0  ;;  %v2406_v18 = vadd.f32 %v2402_v15, %v2321_v17 }
 0x711   : > { %v2742_v62 = vpop.f32.mrb[20].mxu1 }
 0x712   : > { %v3896_v22 = vadd.f32 %v2742_v62, %v2406_v18  ;;  %v3411_v21 = vpop.f32.mrb[21].mxu1 }
 0x714   : > { %3445 = vmatmul.mubr.f32.vlgmr.msra.gmra.mrb[22].mxu0 %v3896_v22 }
 0x715   : > { %3865 = vmatpush3.bf16.msra.mxu0 %v3864_v19  ;;  %3479 = vmatprep.mubr.msk.f32.mxu0 %vm4041_vm15, %v4038_v7  ;;  %v2841_v7 = vld [vmem:[%s5456_s17 + $0x38] sm:$0xff] }
 0x716   : > { %3866 = vmatprep.subr.bf16.mxu0 %v4040_v57  ;;  %v3873_v28 = vpack.c.bf16 %v2841_v7, %v2840_v27 }
 0x719   : > { %3868 = vmatpush3.bf16.msra.mxu0 %v3867_v24 }
 0x71a   : > { %3869 = vmatprep.subr.bf16.mxu0 %v4040_v57 }
 0x71d   : > { %3871 = vmatpush3.bf16.msra.mxu0 %v3870_v52 }
 0x71e   : > { %3872 = vmatprep.subr.bf16.mxu0 %v4040_v57 }
 0x721   : > { %3874 = vmatpush3.bf16.msra.mxu0 %v3873_v28 }
 0x722   : > { %3875 = vmatprep.subr.bf16.mxu0 %v4040_v57 }
 0x725   : > { %3877 = vmatpush3.bf16.msra.mxu0 %v3876_v31 }
 0x726   : > { %3878 = vmatprep.subr.bf16.mxu0 %v4040_v57 }
 0x729   : > { %3880 = vmatpush3.bf16.msra.mxu0 %v3879_v35 }
 0x72a   : > { %3881 = vmatprep.subr.bf16.mxu0 %v4040_v57 }
 0x72d   : > { %3883 = vmatpush3.bf16.msra.mxu0 %v3882_v38 }
 0x72e   : > { %3884 = vmatprep.subr.bf16.mxu0 %v4040_v57  ;;  %v2850_v57 = vld [vmem:[%s5488_s18] sm:$0x1]  ;;  %s3980_s18 = scalar_lea.vmem %s3979_s26, 32 }
 0x72f   : > { %p3982_p1 = scmp.lt.s32.totalorder %s3980_s18, %s3974_s27 }
 0x731   : > { %3886 = vmatpush3.bf16.msra.mxu0 %v3885_v42  ;;  %p3983_p2 = por %p3982_p1, %p3981_p0 }
 0x733   : > { %p3984_p3 = pnand %p3983_p2, %p3977_p13 }
 0x7e7   : > { %v2830_v34 = vpop.f32.mrb[22].mxu0 }
 0x7e8   : > { %v2831_v44 = vadd.f32 %v2830_v34, %v2763_v43  ;;  %v3446_v45 = vpop.f32.mrb[23].mxu0 }
 0x7ea   : > { %3480 = vmatmul.mubr.f32.vlgmr.msra.gmra.mrb[24].mxu0 %v2831_v44 }
 0x8bd   : > { %v2917_v46 = vpop.f32.mrb[24].mxu0 }
 0x8be   : > { %v2918_v47 = vadd.f32 %v2917_v46, %v2850_v57  ;;  %v3481_v48 = vpop.f32.mrb[25].mxu0 }
 0x8c0   : > { %2922 = vst.msk [vmem:[%s594_s28] sm:$0x1] %vm2921_vm1, %v2918_v47 }
 0x8c1   : > { %3987 = shalt.err (!%p3984_p3)
}
 0x8c2   : > { %s3988_s24 = scalar_lea.hbm %s5397_s22, 16  ;;  %s3992_s20 = scalar_lea.hbm %s5489_s25, 32 }
 0x8c3   : > { %p3989_p4 = scmp.ne.s32.totalorder %s5397_s22, %s3988_s24  ;;  %p3993_p9 = scmp.lt.u32.totalorder %s5397_s22, %s5489_s25 }
 0x8c4   : > { %p3994_p10 = scmp.lt.u32.totalorder %s3992_s20, %s3988_s24  ;;  %p3996_p12 = scmp.lt.u32.totalorder %s3988_s24, %s5397_s22 }
 0x8c5   : > { %p3990_p7 = pnand %p3989_p4, %p4181_p5 }
 0x8c6   : > { %p3995_p11 = por %p3994_p10, %p3993_p9 }
 0x8c7   : > { %p3991_p8 = pneg %p3990_p7 }
 0x8c8   : > { %p3997_p13 = por %p3996_p12, %p3995_p11 }
 0x8ca   : > { %p3998_p0 = pnand %p3997_p13, %p3991_p8 }
 0x8cc   : > { %4001 = shalt.err (!%p3998_p0)
}
 0x8cd   : > { %3931 = dma.vmem_to_hbm [thread:$0]  (%p4181_p5), %s5399_s0, 16, %s5397_s22, %s2924_s23  }
 0x8ce PF: > { %s5490_s27 = sld [smem:[#allocation7_spill]]  ;;  %s5491_s26 = sld [smem:[#allocation5_spill]] }
 0x8d4   : > { %p3937_p1 = scmp.ge.s32.totalorder %s5490_s27, 2  ;;  %s2948_s21 = sand.u32 1, %s5491_s26  }
 0x8d5   : > { %s2949_s28 = scalar_lea.sflag [#allocation3], %s2948_s21 }
 0x8d6   : > { %p3934_p2 = pnand %p3937_p1, %p4185_p6 }
 0x8d8   : > { %4019 = dma.done.wait (!%p3934_p2), %s2949_s28, 16  }
 0x8d9   : > { %4021 = vsyncadd (!%p3934_p2), %s2949_s28, 4294967280  ;;  %s5493_s21 = sld [smem:[#allocation8_spill]]  ;;  %s5494_s24 = sld [smem:[#allocation6_spill]] }
 0x8da   : > { %s5495_s20 = sld [smem:[#allocation9_spill]]  ;;  %s5496_s0 = smov %s4028_s30 }
 0x8df   : > { %p29_p3 = scmp.ge.s32.totalorder %s5493_s21, 4   ;;  %s5497_s30 = smov %s5494_s24 }
 0x8e1   :  { %31 = sbr.rel (!%p29_p3) target bundleno = 10 (0xa), region = 141 }
 0x8e8   :  { %2953 = vsyncpa [#allocation3], 1 }
 0x8e9   :  { %2955 = vsyncpa [#allocation3 + $0x1], 1 }

</bundles_post_ra>
